<compile_context>
chip_gen: v7x
topology: tpu7x:2x2x1
jax: 0.10.0
libtpu: 0.0.40
codegen_flags: <defaults>
</compile_context>

<pallas_src>
import functools

import numpy as np
import jax
import jax.numpy as jnp
from jax import lax
from jax.experimental import pallas as pl
from jax.experimental.pallas import tpu as pltpu

try:  # prefer the real EDT (same routine the original `edt` refers to)
    from scipy.ndimage import distance_transform_edt as _scipy_edt
except Exception:  # pragma: no cover - sandbox may not ship scipy
    _scipy_edt = None


# ----------------------------------------------------------------------------
# Host-side distance transform (mirrors HausdorffDTLoss.distance_field, which
# is explicitly computed on CPU with NumPy in the reference implementation).
# ----------------------------------------------------------------------------
def _edt(mask: np.ndarray) -> np.ndarray:
    """Euclidean distance transform: for every True element, the distance to
    the nearest False element (0 at False elements)."""
    mask = np.asarray(mask, dtype=bool)
    if _scipy_edt is not None:
        return np.asarray(_scipy_edt(mask), dtype=np.float64)
    # Exact chunked brute-force fallback (memory-bounded); fine for the small
    # test volumes.  Install scipy for realistic 3D volumes.
    out = np.zeros(mask.shape, dtype=np.float64)
    fg = np.argwhere(mask).astype(np.int64)
    bg = np.argwhere(~mask).astype(np.int64)
    if fg.shape[0] == 0 or bg.shape[0] == 0:
        return out
    nfg = fg.shape[0]
    best = np.full((nfg,), np.iinfo(np.int64).max, dtype=np.int64)
    chunk = max(1, (1 << 21) // nfg)     # keep temporaries ~16 MiB
    for i in range(0, bg.shape[0], chunk):
        bgc = bg[i:i + chunk]
        d2 = np.zeros((nfg, bgc.shape[0]), dtype=np.int64)
        for d in range(fg.shape[1]):
            diff = fg[:, d][:, None] - bgc[:, d][None, :]
            d2 += diff * diff
        best = np.minimum(best, d2.min(axis=1))
    out[tuple(fg.T)] = np.sqrt(best.astype(np.float64))
    return out


def _distance_field(img: np.ndarray) -> np.ndarray:
    """Per-batch EDT(fg) + EDT(bg), exactly as HausdorffDTLoss.distance_field."""
    img = np.asarray(img)
    field = np.zeros(img.shape, dtype=np.float64)
    for b in range(img.shape[0]):
        fg_mask = img[b] > 0.5
        if fg_mask.any():
            bg_mask = ~fg_mask
            field[b] = _edt(fg_mask) + _edt(bg_mask)
    return field


def _one_hot_np(targets: np.ndarray, num_classes: int) -> np.ndarray:
    # (B, X, Y, Z) int -> (B, C, X, Y, Z) float32
    eye = np.eye(num_classes, dtype=np.float32)
    oh = eye[np.asarray(targets).astype(np.int64)]          # (B, X, Y, Z, C)
    return np.moveaxis(oh, -1, 1)                            # (B, C, X, Y, Z)


def compute_fused_distance(logits_np, targets_np, num_classes, hd_alpha=2.0):
    """Single fused host array: dist = pred_dt**alpha + target_dt**alpha."""
    pred_dt = _distance_field(logits_np)
    target_dt = _distance_field(_one_hot_np(targets_np, num_classes))
    return (pred_dt ** hd_alpha + target_dt ** hd_alpha).astype(np.float32)


# ----------------------------------------------------------------------------
# Pallas kernel.
# Inputs (per grid step): one spatial chunk of s_tile = R*128 voxels, laid out
# as (1, C, 1, R, 128) logits f32 / dist bf16 and (1, 1, R, 128) targets i32.
# Outputs are accumulator-resident (index_map constant along the "arbitrary"
# spatial axis): tps/sp (1,1,C,8,128), ce/hd (1,1,8,128).
# ----------------------------------------------------------------------------
def _partial_sums_kernel(logits_ref, tgt_ref, dist_ref,
                         tps_ref, sp_ref, ce_ref, hd_ref,
                         *, s_valid, has_pad):
    s = pl.program_id(2)

    @pl.when(s == 0)
    def _():
        tps_ref[...] = jnp.zeros_like(tps_ref)
        sp_ref[...] = jnp.zeros_like(sp_ref)
        ce_ref[...] = jnp.zeros_like(ce_ref)
        hd_ref[...] = jnp.zeros_like(hd_ref)

    C = logits_ref.shape[1]
    tgt = tgt_ref[0, 0]                              # (R, 128) int32
    R = tgt.shape[0]
    s_tile = R * 128

    def rowsum(x):
        # (R, 128) -> (8, 128): sum of vreg tiles -> pure VPU adds (no XLU).
        return jnp.sum(x.reshape(R // 8, 8, 128), axis=0)

    # Channel max, unrolled over the small static leading dim (VPU elementwise).
    m = logits_ref[0, 0, 0]
    for c in range(1, C):
        m = jnp.maximum(m, logits_ref[0, c, 0])

    # exp + softmax denominator; exps kept so they are never recomputed (EUP
    # stays well below its throughput even at v7x HBM rates).
    exps = []
    denom = None
    for c in range(C):
        e = jnp.exp(logits_ref[0, c, 0] - m)
        exps.append(e)
        denom = e if denom is None else denom + e

    # 1/denom: EUP approx reciprocal + one Newton step (f32-accurate, no divide).
    inv = pl.reciprocal(denom, approx=True)
    inv = inv * (2.0 - denom * inv)

    lse = m + jnp.log(denom)                         # logsumexp per voxel

    if has_pad:
        # Exact masking of the padded tail of the flattened volume: padded
        # voxels contribute 0 to sum(probs) and to CE (tps/cnt/hd are already
        # zero there because targets are padded with -1 and dist with 0).
        chunk = pl.program_id(1) * pl.num_programs(2) + s
        rem = s_valid - chunk * s_tile
        idx = (lax.broadcasted_iota(jnp.int32, (R, 128), 0) * 128
               + lax.broadcasted_iota(jnp.int32, (R, 128), 1))
        valid = (idx < rem).astype(jnp.float32)
        inv = inv * valid                            # probs -> 0 on padded voxels
        ce_vox = lse * valid
    else:
        ce_vox = lse

    hd_vox = None
    for c in range(C):
        lc = logits_ref[0, c, 0]                     # (R, 128) f32
        is_c = tgt == c
        oh = is_c.astype(jnp.float32)
        p_c = exps[c] * inv                          # softmax prob, channel c
        tps_ref[0, 0, c] += rowsum(p_c * oh)
        sp_ref[0, 0, c] += rowsum(p_c)
        d = lc - oh                                  # raw-logit Hausdorff error
        # TODO(synk): on v7x/v6e this elementwise term could run in bf16 on the
        # bf16 VALU (f32 accumulate) for extra headroom once HBM stops binding.
        term = d * d * dist_ref[0, c, 0].astype(jnp.float32)
        hd_vox = term if hd_vox is None else hd_vox + term
        ce_vox = ce_vox - jnp.where(is_c, lc, 0.0)   # subtract picked logit
    hd_ref[0, 0] += rowsum(hd_vox)
    ce_ref[0, 0] += rowsum(ce_vox)


def _partial_sums_pallas(lg, tg, dist, *, s_valid, n_split, vmem_limit_bytes):
    B, C, n_chunks, R, L = lg.shape
    assert L == 128 and R % 8 == 0
    assert n_chunks % n_split == 0
    n_per = n_chunks // n_split
    s_tile = R * 128
    has_pad = (n_chunks * s_tile) != s_valid

    kernel = functools.partial(_partial_sums_kernel,
                               s_valid=s_valid, has_pad=has_pad)

    grid_spec = pltpu.PrefetchScalarGridSpec(
        num_scalar_prefetch=0,
        grid=(B, n_split, n_per),
        in_specs=[
            pl.BlockSpec((1, C, 1, R, 128),
                         lambda b, p, s: (b, 0, p * n_per + s, 0, 0)),   # logits f32
            pl.BlockSpec((1, 1, R, 128),
                         lambda b, p, s: (b, p * n_per + s, 0, 0)),      # targets i32
            pl.BlockSpec((1, C, 1, R, 128),
                         lambda b, p, s: (b, 0, p * n_per + s, 0, 0)),   # dist bf16
        ],
        out_specs=[
            pl.BlockSpec((1, 1, C, 8, 128), lambda b, p, s: (b, p, 0, 0, 0)),  # tps
            pl.BlockSpec((1, 1, C, 8, 128), lambda b, p, s: (b, p, 0, 0, 0)),  # sum probs
            pl.BlockSpec((1, 1, 8, 128), lambda b, p, s: (b, p, 0, 0)),        # ce
            pl.BlockSpec((1, 1, 8, 128), lambda b, p, s: (b, p, 0, 0)),        # hd
        ],
    )
    out_shape = (
        jax.ShapeDtypeStruct((B, n_split, C, 8, 128), jnp.float32),
        jax.ShapeDtypeStruct((B, n_split, C, 8, 128), jnp.float32),
        jax.ShapeDtypeStruct((B, n_split, 8, 128), jnp.float32),
        jax.ShapeDtypeStruct((B, n_split, 8, 128), jnp.float32),
    )
    return pl.pallas_call(
        kernel,
        out_shape=out_shape,
        grid_spec=grid_spec,
        compiler_params=pltpu.CompilerParams(
            dimension_semantics=("parallel", "parallel", "arbitrary"),
            vmem_limit_bytes=vmem_limit_bytes),
    )(lg, tg, dist)


# ----------------------------------------------------------------------------
# segmentation_loss3D forward
# ----------------------------------------------------------------------------
def _round_up(x, m):
    return ((x + m - 1) // m) * m


def _device_defaults():
    """(tile_target_voxels, vmem_limit_bytes) per TPU generation."""
    kind = ""
    try:
        kind = jax.devices()[0].device_kind.lower()
    except Exception:
        pass
    if "v5" in kind:        # v5e: HBM-bound, keep conservative tiling
        return 128 * 1024, 32 * 1024 * 1024
    if "v7" in kind:        # v7x: 64 MiB physical VMEM, 3.2 TB/s HBM
        return 256 * 1024, 48 * 1024 * 1024
    return 256 * 1024, 64 * 1024 * 1024   # v6e & default (128 MiB physical)


def _pick_s_tile(S, target_voxels):
    """Spatial tile (voxels): multiple of 1024 (= 8 sublanes * 128 lanes)."""
    s_min = _round_up(S, 1024)
    if s_min <= target_voxels:
        return s_min
    return (target_voxels // 1024) * 1024


def segmentation_loss_3d(inputs, targets, alpha, percentile=95,
                         hd_alpha=2.0, eps=1e-5, s_tile=None, n_split=None):
    """inputs: (B, C, X, Y, Z) float32 logits; targets: (B, X, Y, Z) int labels.
    `percentile` is stored-but-unused in the reference forward pass."""
    del percentile
    B, C = int(inputs.shape[0]), int(inputs.shape[1])
    S = int(np.prod(inputs.shape[2:]))

    # ---- host side (mirrors the original .cpu().numpy() EDT path) ----------
    inputs_np = np.asarray(inputs, dtype=np.float32)
    targets_np = np.asarray(targets)
    dist_np = compute_fused_distance(inputs_np, targets_np, C, hd_alpha)  # f32

    # Per-class voxel counts for the Tversky false-negative term: exact and
    # essentially free on the host (the data is already there for the EDT).
    tflat = targets_np.reshape(B, S)
    cnt_np = np.stack([(tflat == c).sum(axis=1) for c in range(C)],
                      axis=1).astype(np.float32)                          # (B, C)

    tile_target, vmem_limit = _device_defaults()
    if s_tile is None:
        s_tile = _pick_s_tile(S, tile_target)
    assert s_tile % 1024 == 0, "s_tile must be a multiple of 1024 voxels (8*128)"
    S_pad = _round_up(S, s_tile)
    pad = S_pad - S
    n_chunks = S_pad // s_tile
    R = s_tile // 128
    if n_split is None:
        # Second "parallel" grid axis so both v7x TensorCores get work even
        # when B == 1 (harmless serial loop on single-TC generations).
        n_split = 2 if (n_chunks % 2 == 0 and n_chunks >= 2) else 1

    # Host-side pad + relayout + bf16 cast: no device-side jnp.pad / cast
    # passes (which would double HBM traffic of this bandwidth-bound kernel).
    # Padded voxels: logits=0, target=-1 (one-hot all zero), dist=0; sum-probs
    # and CE of the padded tail are masked exactly inside the kernel.
    lg = inputs_np.reshape(B, C, S)
    di = dist_np.reshape(B, C, S)
    tg = tflat.astype(np.int32)
    if pad:
        lg = np.concatenate([lg, np.zeros((B, C, pad), np.float32)], axis=-1)
        di = np.concatenate([di, np.zeros((B, C, pad), np.float32)], axis=-1)
        tg = np.concatenate([tg, np.full((B, pad), -1, np.int32)], axis=-1)
    # TODO(synk): on v5e, additionally stream targets as int8 (and optionally
    # logits as bf16) to shave ~11% / ~28% of HBM bytes.
    lg = jnp.asarray(lg.reshape(B, C, n_chunks, R, 128))                  # f32
    tg = jnp.asarray(tg.reshape(B, n_chunks, R, 128))                     # i32
    di = jnp.asarray(di.reshape(B, C, n_chunks, R, 128).astype(jnp.bfloat16))

    tps_o, sp_o, ce_o, hd_o = _partial_sums_pallas(
        lg, tg, di, s_valid=S, n_split=n_split, vmem_limit_bytes=vmem_limit)

    # Final tiny cross-lane/sublane collapse happens here, once.
    tps = jnp.sum(tps_o, axis=(1, 3, 4))            # (B, C)
    sp = jnp.sum(sp_o, axis=(1, 3, 4))              # (B, C)
    cnt = jnp.asarray(cnt_np)                       # (B, C)

    # Tversky / dice with algebraic fps / fns
    beta = 2.0 - alpha
    fps = sp - tps                                  # sum probs * (1 - onehot)
    fns = cnt - tps                                 # sum (1 - probs) * onehot
    tv = 2.0 * tps / (2.0 * tps + alpha * fps + beta * fns + eps)
    tv = jnp.mean(tv, axis=0)                       # (C,)
    dice = 1.0 - jnp.mean(tv[1:])

    # Cross entropy (mean over B * spatial)
    ce = jnp.sum(ce_o) / (B * S)

    # Hausdorff DT loss (mean over B * C * spatial)
    hd = jnp.sum(hd_o) / (B * C * S)

    return dice + ce + hd


# ----------------------------------------------------------------------------
# Pure-JAX reference for verification (consumes the same fused bf16 distance)
# ----------------------------------------------------------------------------
def _reference_loss(inputs, targets, dist, alpha, eps=1e-5):
    C = inputs.shape[1]
    onehot = jax.nn.one_hot(targets, C, axis=1, dtype=jnp.float32)
    probs = jax.nn.softmax(inputs, axis=1)
    dims = tuple(range(2, inputs.ndim))
    tps = jnp.sum(probs * onehot, dims)
    fps = jnp.sum(probs * (1.0 - onehot), dims) * alpha
    fns = jnp.sum((1.0 - probs) * onehot, dims) * (2.0 - alpha)
    tv = 2.0 * tps / (2.0 * tps + fps + fns + eps)
    tv = jnp.mean(tv, axis=0)
    dice = 1.0 - jnp.mean(tv[1:])

    logp = jax.nn.log_softmax(inputs, axis=1)
    ce = -jnp.mean(jnp.sum(logp * onehot, axis=1))

    pred_err = (inputs - onehot) ** 2
    hd = jnp.mean(pred_err * dist)
    return dice + ce + hd


if __name__ == "__main__":
    key = jax.random.PRNGKey(0)
    # S = 8*20*20 = 3200 voxels -> pads to 4096 = 4 chunks of 1024: exercises
    # the dual-TensorCore split, in-core spatial accumulation and the exact
    # ragged-tail masking path.
    B, C, X, Y, Z = 2, 4, 8, 20, 20
    k1, k2 = jax.random.split(key)
    inputs = jax.random.normal(k1, (B, C, X, Y, Z), dtype=jnp.float32)
    targets = jax.random.randint(k2, (B, X, Y, Z), 0, C, dtype=jnp.int32)

    alpha = 1.0           # tversky alpha == 1.0 -> Dice
    percentile = 95

    loss = segmentation_loss_3d(inputs, targets, alpha, percentile,
                                s_tile=1024, n_split=2)
    loss = jax.block_until_ready(loss)

    # Verify against a pure-JAX reference fed the identical bf16-quantized
    # fused distance field the kernel consumes.
    dist_np = compute_fused_distance(np.asarray(inputs), np.asarray(targets),
                                     C, 2.0)
    dist_ref = jnp.asarray(dist_np.astype(jnp.bfloat16)).astype(jnp.float32)
    ref = _reference_loss(inputs, targets, dist_ref, alpha)
    ref = jax.block_until_ready(ref)

    np.testing.assert_allclose(np.asarray(loss), np.asarray(ref),
                               rtol=2e-3, atol=1e-3)
    print("KERNEL_OK")
</pallas_src>

<mosaic_0001>
module attributes {stable_mosaic.version = 11 : i64} {
  func.func @_partial_sums_kernel(%arg0: i32, %arg1: i32, %arg2: i32, %arg3: memref<1x4x1x8x128xf32, #tpu.memory_space<vmem>>, %arg4: memref<1x1x8x128xi32, #tpu.memory_space<vmem>>, %arg5: memref<1x4x1x8x128xbf16, #tpu.memory_space<vmem>>, %arg6: memref<1x1x4x8x128xf32, #tpu.memory_space<vmem>>, %arg7: memref<1x1x4x8x128xf32, #tpu.memory_space<vmem>>, %arg8: memref<1x1x8x128xf32, #tpu.memory_space<vmem>>, %arg9: memref<1x1x8x128xf32, #tpu.memory_space<vmem>>) attributes {dimension_semantics = [#tpu.dimension_semantics<parallel>, #tpu.dimension_semantics<parallel>, #tpu.dimension_semantics<arbitrary>], iteration_bounds = array<i64: 2, 2, 2>, scalar_prefetch = 0 : i64, scratch_operands = 0 : i64, tpu.core_type = #tpu.core_type<tc>, window_params = [{transform_indices = @transform_0, window_bounds = array<i64: 1, 4, 1, 8, 128>}, {transform_indices = @transform_1, window_bounds = array<i64: 1, 1, 8, 128>}, {transform_indices = @transform_2, window_bounds = array<i64: 1, 4, 1, 8, 128>}, {transform_indices = @transform_3, window_bounds = array<i64: 1, 1, 4, 8, 128>}, {transform_indices = @transform_4, window_bounds = array<i64: 1, 1, 4, 8, 128>}, {transform_indices = @transform_5, window_bounds = array<i64: 1, 1, 8, 128>}, {transform_indices = @transform_6, window_bounds = array<i64: 1, 1, 8, 128>}]} {
    %c0_i32 = arith.constant 0 : i32
    %0 = arith.cmpi eq, %arg2, %c0_i32 : i32
    %1 = arith.extui %0 : i1 to i32
    %c0_i32_0 = arith.constant 0 : i32
    %2 = arith.cmpi ne, %1, %c0_i32_0 : i32
    scf.if %2 {
      %cst_193 = arith.constant 0.000000e+00 : f32
      %208 = vector.broadcast %cst_193 : f32 to vector<1x1x4x8x128xf32>
      %c0_194 = arith.constant 0 : index
      %c0_195 = arith.constant 0 : index
      %c0_196 = arith.constant 0 : index
      %c0_197 = arith.constant 0 : index
      %c0_198 = arith.constant 0 : index
      %209 = vector.load %arg6[%c0_194, %c0_195, %c0_196, %c0_197, %c0_198] : memref<1x1x4x8x128xf32, #tpu.memory_space<vmem>>, vector<1x1x4x8x128xf32>
      tpu.vector_store %arg6[%c0_194, %c0_195, %c0_196, %c0_197, %c0_198], %208 {strides = array<i32>} : memref<1x1x4x8x128xf32, #tpu.memory_space<vmem>>, vector<1x1x4x8x128xf32>,
      %cst_199 = arith.constant 0.000000e+00 : f32
      %210 = vector.broadcast %cst_199 : f32 to vector<1x1x4x8x128xf32>
      %c0_200 = arith.constant 0 : index
      %c0_201 = arith.constant 0 : index
      %c0_202 = arith.constant 0 : index
      %c0_203 = arith.constant 0 : index
      %c0_204 = arith.constant 0 : index
      %211 = vector.load %arg7[%c0_200, %c0_201, %c0_202, %c0_203, %c0_204] : memref<1x1x4x8x128xf32, #tpu.memory_space<vmem>>, vector<1x1x4x8x128xf32>
      tpu.vector_store %arg7[%c0_200, %c0_201, %c0_202, %c0_203, %c0_204], %210 {strides = array<i32>} : memref<1x1x4x8x128xf32, #tpu.memory_space<vmem>>, vector<1x1x4x8x128xf32>,
      %cst_205 = arith.constant 0.000000e+00 : f32
      %212 = vector.broadcast %cst_205 : f32 to vector<1x1x8x128xf32>
      %c0_206 = arith.constant 0 : index
      %c0_207 = arith.constant 0 : index
      %c0_208 = arith.constant 0 : index
      %c0_209 = arith.constant 0 : index
      %213 = vector.load %arg8[%c0_206, %c0_207, %c0_208, %c0_209] : memref<1x1x8x128xf32, #tpu.memory_space<vmem>>, vector<1x1x8x128xf32>
      tpu.vector_store %arg8[%c0_206, %c0_207, %c0_208, %c0_209], %212 {strides = array<i32>} : memref<1x1x8x128xf32, #tpu.memory_space<vmem>>, vector<1x1x8x128xf32>,
      %cst_210 = arith.constant 0.000000e+00 : f32
      %214 = vector.broadcast %cst_210 : f32 to vector<1x1x8x128xf32>
      %c0_211 = arith.constant 0 : index
      %c0_212 = arith.constant 0 : index
      %c0_213 = arith.constant 0 : index
      %c0_214 = arith.constant 0 : index
      %215 = vector.load %arg9[%c0_211, %c0_212, %c0_213, %c0_214] : memref<1x1x8x128xf32, #tpu.memory_space<vmem>>, vector<1x1x8x128xf32>
      tpu.vector_store %arg9[%c0_211, %c0_212, %c0_213, %c0_214], %214 {strides = array<i32>} : memref<1x1x8x128xf32, #tpu.memory_space<vmem>>, vector<1x1x8x128xf32>,
    } else {
    }
    %c0 = arith.constant 0 : index
    %c0_1 = arith.constant 0 : index
    %c0_2 = arith.constant 0 : index
    %c0_3 = arith.constant 0 : index
    %3 = vector.load %arg4[%c0, %c0_1, %c0_2, %c0_3] : memref<1x1x8x128xi32, #tpu.memory_space<vmem>>, vector<1x1x8x128xi32>
    %4 = vector.shape_cast %3 : vector<1x1x8x128xi32> to vector<8x128xi32>
    %c0_4 = arith.constant 0 : index
    %c0_5 = arith.constant 0 : index
    %c0_6 = arith.constant 0 : index
    %c0_7 = arith.constant 0 : index
    %c0_8 = arith.constant 0 : index
    %5 = vector.load %arg3[%c0_4, %c0_5, %c0_6, %c0_7, %c0_8] : memref<1x4x1x8x128xf32, #tpu.memory_space<vmem>>, vector<1x1x1x8x128xf32>
    %6 = vector.shape_cast %5 : vector<1x1x1x8x128xf32> to vector<8x128xf32>
    %c0_9 = arith.constant 0 : index
    %c1 = arith.constant 1 : index
    %c0_10 = arith.constant 0 : index
    %c0_11 = arith.constant 0 : index
    %c0_12 = arith.constant 0 : index
    %7 = vector.load %arg3[%c0_9, %c1, %c0_10, %c0_11, %c0_12] : memref<1x4x1x8x128xf32, #tpu.memory_space<vmem>>, vector<1x1x1x8x128xf32>
    %8 = vector.shape_cast %7 : vector<1x1x1x8x128xf32> to vector<8x128xf32>
    %9 = arith.maximumf %6, %8 : vector<8x128xf32>
    %c0_13 = arith.constant 0 : index
    %c2 = arith.constant 2 : index
    %c0_14 = arith.constant 0 : index
    %c0_15 = arith.constant 0 : index
    %c0_16 = arith.constant 0 : index
    %10 = vector.load %arg3[%c0_13, %c2, %c0_14, %c0_15, %c0_16] : memref<1x4x1x8x128xf32, #tpu.memory_space<vmem>>, vector<1x1x1x8x128xf32>
    %11 = vector.shape_cast %10 : vector<1x1x1x8x128xf32> to vector<8x128xf32>
    %12 = arith.maximumf %9, %11 : vector<8x128xf32>
    %c0_17 = arith.constant 0 : index
    %c3 = arith.constant 3 : index
    %c0_18 = arith.constant 0 : index
    %c0_19 = arith.constant 0 : index
    %c0_20 = arith.constant 0 : index
    %13 = vector.load %arg3[%c0_17, %c3, %c0_18, %c0_19, %c0_20] : memref<1x4x1x8x128xf32, #tpu.memory_space<vmem>>, vector<1x1x1x8x128xf32>
    %14 = vector.shape_cast %13 : vector<1x1x1x8x128xf32> to vector<8x128xf32>
    %15 = arith.maximumf %12, %14 : vector<8x128xf32>
    %c0_21 = arith.constant 0 : index
    %c0_22 = arith.constant 0 : index
    %c0_23 = arith.constant 0 : index
    %c0_24 = arith.constant 0 : index
    %c0_25 = arith.constant 0 : index
    %16 = vector.load %arg3[%c0_21, %c0_22, %c0_23, %c0_24, %c0_25] : memref<1x4x1x8x128xf32, #tpu.memory_space<vmem>>, vector<1x1x1x8x128xf32>
    %17 = vector.shape_cast %16 : vector<1x1x1x8x128xf32> to vector<8x128xf32>
    %18 = arith.subf %17, %15 : vector<8x128xf32>
    %19 = math.exp %18 : vector<8x128xf32>
    %c0_26 = arith.constant 0 : index
    %c1_27 = arith.constant 1 : index
    %c0_28 = arith.constant 0 : index
    %c0_29 = arith.constant 0 : index
    %c0_30 = arith.constant 0 : index
    %20 = vector.load %arg3[%c0_26, %c1_27, %c0_28, %c0_29, %c0_30] : memref<1x4x1x8x128xf32, #tpu.memory_space<vmem>>, vector<1x1x1x8x128xf32>
    %21 = vector.shape_cast %20 : vector<1x1x1x8x128xf32> to vector<8x128xf32>
    %22 = arith.subf %21, %15 : vector<8x128xf32>
    %23 = math.exp %22 : vector<8x128xf32>
    %24 = arith.addf %19, %23 : vector<8x128xf32>
    %c0_31 = arith.constant 0 : index
    %c2_32 = arith.constant 2 : index
    %c0_33 = arith.constant 0 : index
    %c0_34 = arith.constant 0 : index
    %c0_35 = arith.constant 0 : index
    %25 = vector.load %arg3[%c0_31, %c2_32, %c0_33, %c0_34, %c0_35] : memref<1x4x1x8x128xf32, #tpu.memory_space<vmem>>, vector<1x1x1x8x128xf32>
    %26 = vector.shape_cast %25 : vector<1x1x1x8x128xf32> to vector<8x128xf32>
    %27 = arith.subf %26, %15 : vector<8x128xf32>
    %28 = math.exp %27 : vector<8x128xf32>
    %29 = arith.addf %24, %28 : vector<8x128xf32>
    %c0_36 = arith.constant 0 : index
    %c3_37 = arith.constant 3 : index
    %c0_38 = arith.constant 0 : index
    %c0_39 = arith.constant 0 : index
    %c0_40 = arith.constant 0 : index
    %30 = vector.load %arg3[%c0_36, %c3_37, %c0_38, %c0_39, %c0_40] : memref<1x4x1x8x128xf32, #tpu.memory_space<vmem>>, vector<1x1x1x8x128xf32>
    %31 = vector.shape_cast %30 : vector<1x1x1x8x128xf32> to vector<8x128xf32>
    %32 = arith.subf %31, %15 : vector<8x128xf32>
    %33 = math.exp %32 : vector<8x128xf32>
    %34 = arith.addf %29, %33 : vector<8x128xf32>
    %35 = tpu.reciprocal %34 {approx = true} : vector<8x128xf32> -> vector<8x128xf32>
    %36 = arith.mulf %34, %35 : vector<8x128xf32>
    %cst = arith.constant 2.000000e+00 : f32
    %37 = vector.broadcast %cst : f32 to vector<8x128xf32>
    %38 = arith.subf %37, %36 : vector<8x128xf32>
    %39 = arith.mulf %35, %38 : vector<8x128xf32>
    %40 = math.log %34 : vector<8x128xf32>
    %41 = arith.addf %15, %40 : vector<8x128xf32>
    %c2_i32 = arith.constant 2 : i32
    %42 = arith.muli %arg1, %c2_i32 : i32
    %43 = arith.addi %42, %arg2 : i32
    %c1024_i32 = arith.constant 1024 : i32
    %44 = arith.muli %43, %c1024_i32 : i32
    %c3200_i32 = arith.constant 3200 : i32
    %45 = arith.subi %c3200_i32, %44 : i32
    %46 = tpu.iota {dimensions = array<i32: 0>} : vector<8x128xi32>
    %c128_i32 = arith.constant 128 : i32
    %47 = vector.broadcast %c128_i32 : i32 to vector<8x128xi32>
    %48 = arith.muli %46, %47 : vector<8x128xi32>
    %49 = tpu.iota {dimensions = array<i32: 1>} : vector<8x128xi32>
    %50 = arith.addi %48, %49 : vector<8x128xi32>
    %51 = vector.broadcast %45 : i32 to vector<8x128xi32>
    %52 = arith.cmpi slt, %50, %51 : vector<8x128xi32>
    %53 = arith.extui %52 : vector<8x128xi1> to vector<8x128xi32>
    %54 = arith.sitofp %53 : vector<8x128xi32> to vector<8x128xf32>
    %55 = arith.mulf %39, %54 : vector<8x128xf32>
    %56 = arith.mulf %41, %54 : vector<8x128xf32>
    %c0_41 = arith.constant 0 : index
    %c0_42 = arith.constant 0 : index
    %c0_43 = arith.constant 0 : index
    %c0_44 = arith.constant 0 : index
    %c0_45 = arith.constant 0 : index
    %57 = vector.load %arg3[%c0_41, %c0_42, %c0_43, %c0_44, %c0_45] : memref<1x4x1x8x128xf32, #tpu.memory_space<vmem>>, vector<1x1x1x8x128xf32>
    %58 = vector.shape_cast %57 : vector<1x1x1x8x128xf32> to vector<8x128xf32>
    %c0_i32_46 = arith.constant 0 : i32
    %59 = vector.broadcast %c0_i32_46 : i32 to vector<8x128xi32>
    %60 = arith.cmpi eq, %4, %59 : vector<8x128xi32>
    %61 = arith.extui %60 : vector<8x128xi1> to vector<8x128xi32>
    %62 = arith.sitofp %61 : vector<8x128xi32> to vector<8x128xf32>
    %63 = arith.mulf %19, %55 : vector<8x128xf32>
    %c0_47 = arith.constant 0 : index
    %c0_48 = arith.constant 0 : index
    %c0_49 = arith.constant 0 : index
    %c0_50 = arith.constant 0 : index
    %c0_51 = arith.constant 0 : index
    %64 = vector.load %arg6[%c0_47, %c0_48, %c0_49, %c0_50, %c0_51] : memref<1x1x4x8x128xf32, #tpu.memory_space<vmem>>, vector<1x1x1x8x128xf32>
    %65 = vector.shape_cast %64 : vector<1x1x1x8x128xf32> to vector<8x128xf32>
    %66 = arith.mulf %63, %62 : vector<8x128xf32>
    %67 = vector.shape_cast %66 : vector<8x128xf32> to vector<1x8x128xf32>
    %cst_52 = arith.constant dense<0.000000e+00> : vector<8x128xf32>
    %68 = vector.multi_reduction <add>, %67, %cst_52 [0] : vector<1x8x128xf32> to vector<8x128xf32>
    %69 = arith.addf %65, %68 : vector<8x128xf32>
    %c0_53 = arith.constant 0 : index
    %c0_54 = arith.constant 0 : index
    %c0_55 = arith.constant 0 : index
    %c0_56 = arith.constant 0 : index
    %c0_57 = arith.constant 0 : index
    %70 = vector.load %arg6[%c0_53, %c0_54, %c0_55, %c0_56, %c0_57] : memref<1x1x4x8x128xf32, #tpu.memory_space<vmem>>, vector<1x1x1x8x128xf32>
    %71 = vector.shape_cast %70 : vector<1x1x1x8x128xf32> to vector<8x128xf32>
    %72 = vector.shape_cast %69 : vector<8x128xf32> to vector<1x1x1x8x128xf32>
    tpu.vector_store %arg6[%c0_53, %c0_54, %c0_55, %c0_56, %c0_57], %72 {strides = array<i32>} : memref<1x1x4x8x128xf32, #tpu.memory_space<vmem>>, vector<1x1x1x8x128xf32>,
    %c0_58 = arith.constant 0 : index
    %c0_59 = arith.constant 0 : index
    %c0_60 = arith.constant 0 : index
    %c0_61 = arith.constant 0 : index
    %c0_62 = arith.constant 0 : index
    %73 = vector.load %arg7[%c0_58, %c0_59, %c0_60, %c0_61, %c0_62] : memref<1x1x4x8x128xf32, #tpu.memory_space<vmem>>, vector<1x1x1x8x128xf32>
    %74 = vector.shape_cast %73 : vector<1x1x1x8x128xf32> to vector<8x128xf32>
    %75 = vector.shape_cast %63 : vector<8x128xf32> to vector<1x8x128xf32>
    %cst_63 = arith.constant dense<0.000000e+00> : vector<8x128xf32>
    %76 = vector.multi_reduction <add>, %75, %cst_63 [0] : vector<1x8x128xf32> to vector<8x128xf32>
    %77 = arith.addf %74, %76 : vector<8x128xf32>
    %c0_64 = arith.constant 0 : index
    %c0_65 = arith.constant 0 : index
    %c0_66 = arith.constant 0 : index
    %c0_67 = arith.constant 0 : index
    %c0_68 = arith.constant 0 : index
    %78 = vector.load %arg7[%c0_64, %c0_65, %c0_66, %c0_67, %c0_68] : memref<1x1x4x8x128xf32, #tpu.memory_space<vmem>>, vector<1x1x1x8x128xf32>
    %79 = vector.shape_cast %78 : vector<1x1x1x8x128xf32> to vector<8x128xf32>
    %80 = vector.shape_cast %77 : vector<8x128xf32> to vector<1x1x1x8x128xf32>
    tpu.vector_store %arg7[%c0_64, %c0_65, %c0_66, %c0_67, %c0_68], %80 {strides = array<i32>} : memref<1x1x4x8x128xf32, #tpu.memory_space<vmem>>, vector<1x1x1x8x128xf32>,
    %81 = arith.subf %58, %62 : vector<8x128xf32>
    %82 = arith.mulf %81, %81 : vector<8x128xf32>
    %c0_69 = arith.constant 0 : index
    %c0_70 = arith.constant 0 : index
    %c0_71 = arith.constant 0 : index
    %c0_72 = arith.constant 0 : index
    %c0_73 = arith.constant 0 : index
    %83 = vector.load %arg5[%c0_69, %c0_70, %c0_71, %c0_72, %c0_73] : memref<1x4x1x8x128xbf16, #tpu.memory_space<vmem>>, vector<1x1x1x8x128xbf16>
    %84 = vector.shape_cast %83 : vector<1x1x1x8x128xbf16> to vector<8x128xbf16>
    %85 = arith.extf %84 : vector<8x128xbf16> to vector<8x128xf32>
    %86 = arith.mulf %82, %85 : vector<8x128xf32>
    %cst_74 = arith.constant 0.000000e+00 : f32
    %87 = vector.broadcast %cst_74 : f32 to vector<8x128xf32>
    %88 = arith.select %60, %58, %87 : vector<8x128xi1>, vector<8x128xf32>
    %89 = arith.subf %56, %88 : vector<8x128xf32>
    %c0_75 = arith.constant 0 : index
    %c1_76 = arith.constant 1 : index
    %c0_77 = arith.constant 0 : index
    %c0_78 = arith.constant 0 : index
    %c0_79 = arith.constant 0 : index
    %90 = vector.load %arg3[%c0_75, %c1_76, %c0_77, %c0_78, %c0_79] : memref<1x4x1x8x128xf32, #tpu.memory_space<vmem>>, vector<1x1x1x8x128xf32>
    %91 = vector.shape_cast %90 : vector<1x1x1x8x128xf32> to vector<8x128xf32>
    %c1_i32 = arith.constant 1 : i32
    %92 = vector.broadcast %c1_i32 : i32 to vector<8x128xi32>
    %93 = arith.cmpi eq, %4, %92 : vector<8x128xi32>
    %94 = arith.extui %93 : vector<8x128xi1> to vector<8x128xi32>
    %95 = arith.sitofp %94 : vector<8x128xi32> to vector<8x128xf32>
    %96 = arith.mulf %23, %55 : vector<8x128xf32>
    %c0_80 = arith.constant 0 : index
    %c0_81 = arith.constant 0 : index
    %c1_82 = arith.constant 1 : index
    %c0_83 = arith.constant 0 : index
    %c0_84 = arith.constant 0 : index
    %97 = vector.load %arg6[%c0_80, %c0_81, %c1_82, %c0_83, %c0_84] : memref<1x1x4x8x128xf32, #tpu.memory_space<vmem>>, vector<1x1x1x8x128xf32>
    %98 = vector.shape_cast %97 : vector<1x1x1x8x128xf32> to vector<8x128xf32>
    %99 = arith.mulf %96, %95 : vector<8x128xf32>
    %100 = vector.shape_cast %99 : vector<8x128xf32> to vector<1x8x128xf32>
    %cst_85 = arith.constant dense<0.000000e+00> : vector<8x128xf32>
    %101 = vector.multi_reduction <add>, %100, %cst_85 [0] : vector<1x8x128xf32> to vector<8x128xf32>
    %102 = arith.addf %98, %101 : vector<8x128xf32>
    %c0_86 = arith.constant 0 : index
    %c0_87 = arith.constant 0 : index
    %c1_88 = arith.constant 1 : index
    %c0_89 = arith.constant 0 : index
    %c0_90 = arith.constant 0 : index
    %103 = vector.load %arg6[%c0_86, %c0_87, %c1_88, %c0_89, %c0_90] : memref<1x1x4x8x128xf32, #tpu.memory_space<vmem>>, vector<1x1x1x8x128xf32>
    %104 = vector.shape_cast %103 : vector<1x1x1x8x128xf32> to vector<8x128xf32>
    %105 = vector.shape_cast %102 : vector<8x128xf32> to vector<1x1x1x8x128xf32>
    tpu.vector_store %arg6[%c0_86, %c0_87, %c1_88, %c0_89, %c0_90], %105 {strides = array<i32>} : memref<1x1x4x8x128xf32, #tpu.memory_space<vmem>>, vector<1x1x1x8x128xf32>,
    %c0_91 = arith.constant 0 : index
    %c0_92 = arith.constant 0 : index
    %c1_93 = arith.constant 1 : index
    %c0_94 = arith.constant 0 : index
    %c0_95 = arith.constant 0 : index
    %106 = vector.load %arg7[%c0_91, %c0_92, %c1_93, %c0_94, %c0_95] : memref<1x1x4x8x128xf32, #tpu.memory_space<vmem>>, vector<1x1x1x8x128xf32>
    %107 = vector.shape_cast %106 : vector<1x1x1x8x128xf32> to vector<8x128xf32>
    %108 = vector.shape_cast %96 : vector<8x128xf32> to vector<1x8x128xf32>
    %cst_96 = arith.constant dense<0.000000e+00> : vector<8x128xf32>
    %109 = vector.multi_reduction <add>, %108, %cst_96 [0] : vector<1x8x128xf32> to vector<8x128xf32>
    %110 = arith.addf %107, %109 : vector<8x128xf32>
    %c0_97 = arith.constant 0 : index
    %c0_98 = arith.constant 0 : index
    %c1_99 = arith.constant 1 : index
    %c0_100 = arith.constant 0 : index
    %c0_101 = arith.constant 0 : index
    %111 = vector.load %arg7[%c0_97, %c0_98, %c1_99, %c0_100, %c0_101] : memref<1x1x4x8x128xf32, #tpu.memory_space<vmem>>, vector<1x1x1x8x128xf32>
    %112 = vector.shape_cast %111 : vector<1x1x1x8x128xf32> to vector<8x128xf32>
    %113 = vector.shape_cast %110 : vector<8x128xf32> to vector<1x1x1x8x128xf32>
    tpu.vector_store %arg7[%c0_97, %c0_98, %c1_99, %c0_100, %c0_101], %113 {strides = array<i32>} : memref<1x1x4x8x128xf32, #tpu.memory_space<vmem>>, vector<1x1x1x8x128xf32>,
    %114 = arith.subf %91, %95 : vector<8x128xf32>
    %115 = arith.mulf %114, %114 : vector<8x128xf32>
    %c0_102 = arith.constant 0 : index
    %c1_103 = arith.constant 1 : index
    %c0_104 = arith.constant 0 : index
    %c0_105 = arith.constant 0 : index
    %c0_106 = arith.constant 0 : index
    %116 = vector.load %arg5[%c0_102, %c1_103, %c0_104, %c0_105, %c0_106] : memref<1x4x1x8x128xbf16, #tpu.memory_space<vmem>>, vector<1x1x1x8x128xbf16>
    %117 = vector.shape_cast %116 : vector<1x1x1x8x128xbf16> to vector<8x128xbf16>
    %118 = arith.extf %117 : vector<8x128xbf16> to vector<8x128xf32>
    %119 = arith.mulf %115, %118 : vector<8x128xf32>
    %120 = arith.addf %86, %119 : vector<8x128xf32>
    %cst_107 = arith.constant 0.000000e+00 : f32
    %121 = vector.broadcast %cst_107 : f32 to vector<8x128xf32>
    %122 = arith.select %93, %91, %121 : vector<8x128xi1>, vector<8x128xf32>
    %123 = arith.subf %89, %122 : vector<8x128xf32>
    %c0_108 = arith.constant 0 : index
    %c2_109 = arith.constant 2 : index
    %c0_110 = arith.constant 0 : index
    %c0_111 = arith.constant 0 : index
    %c0_112 = arith.constant 0 : index
    %124 = vector.load %arg3[%c0_108, %c2_109, %c0_110, %c0_111, %c0_112] : memref<1x4x1x8x128xf32, #tpu.memory_space<vmem>>, vector<1x1x1x8x128xf32>
    %125 = vector.shape_cast %124 : vector<1x1x1x8x128xf32> to vector<8x128xf32>
    %c2_i32_113 = arith.constant 2 : i32
    %126 = vector.broadcast %c2_i32_113 : i32 to vector<8x128xi32>
    %127 = arith.cmpi eq, %4, %126 : vector<8x128xi32>
    %128 = arith.extui %127 : vector<8x128xi1> to vector<8x128xi32>
    %129 = arith.sitofp %128 : vector<8x128xi32> to vector<8x128xf32>
    %130 = arith.mulf %28, %55 : vector<8x128xf32>
    %c0_114 = arith.constant 0 : index
    %c0_115 = arith.constant 0 : index
    %c2_116 = arith.constant 2 : index
    %c0_117 = arith.constant 0 : index
    %c0_118 = arith.constant 0 : index
    %131 = vector.load %arg6[%c0_114, %c0_115, %c2_116, %c0_117, %c0_118] : memref<1x1x4x8x128xf32, #tpu.memory_space<vmem>>, vector<1x1x1x8x128xf32>
    %132 = vector.shape_cast %131 : vector<1x1x1x8x128xf32> to vector<8x128xf32>
    %133 = arith.mulf %130, %129 : vector<8x128xf32>
    %134 = vector.shape_cast %133 : vector<8x128xf32> to vector<1x8x128xf32>
    %cst_119 = arith.constant dense<0.000000e+00> : vector<8x128xf32>
    %135 = vector.multi_reduction <add>, %134, %cst_119 [0] : vector<1x8x128xf32> to vector<8x128xf32>
    %136 = arith.addf %132, %135 : vector<8x128xf32>
    %c0_120 = arith.constant 0 : index
    %c0_121 = arith.constant 0 : index
    %c2_122 = arith.constant 2 : index
    %c0_123 = arith.constant 0 : index
    %c0_124 = arith.constant 0 : index
    %137 = vector.load %arg6[%c0_120, %c0_121, %c2_122, %c0_123, %c0_124] : memref<1x1x4x8x128xf32, #tpu.memory_space<vmem>>, vector<1x1x1x8x128xf32>
    %138 = vector.shape_cast %137 : vector<1x1x1x8x128xf32> to vector<8x128xf32>
    %139 = vector.shape_cast %136 : vector<8x128xf32> to vector<1x1x1x8x128xf32>
    tpu.vector_store %arg6[%c0_120, %c0_121, %c2_122, %c0_123, %c0_124], %139 {strides = array<i32>} : memref<1x1x4x8x128xf32, #tpu.memory_space<vmem>>, vector<1x1x1x8x128xf32>,
    %c0_125 = arith.constant 0 : index
    %c0_126 = arith.constant 0 : index
    %c2_127 = arith.constant 2 : index
    %c0_128 = arith.constant 0 : index
    %c0_129 = arith.constant 0 : index
    %140 = vector.load %arg7[%c0_125, %c0_126, %c2_127, %c0_128, %c0_129] : memref<1x1x4x8x128xf32, #tpu.memory_space<vmem>>, vector<1x1x1x8x128xf32>
    %141 = vector.shape_cast %140 : vector<1x1x1x8x128xf32> to vector<8x128xf32>
    %142 = vector.shape_cast %130 : vector<8x128xf32> to vector<1x8x128xf32>
    %cst_130 = arith.constant dense<0.000000e+00> : vector<8x128xf32>
    %143 = vector.multi_reduction <add>, %142, %cst_130 [0] : vector<1x8x128xf32> to vector<8x128xf32>
    %144 = arith.addf %141, %143 : vector<8x128xf32>
    %c0_131 = arith.constant 0 : index
    %c0_132 = arith.constant 0 : index
    %c2_133 = arith.constant 2 : index
    %c0_134 = arith.constant 0 : index
    %c0_135 = arith.constant 0 : index
    %145 = vector.load %arg7[%c0_131, %c0_132, %c2_133, %c0_134, %c0_135] : memref<1x1x4x8x128xf32, #tpu.memory_space<vmem>>, vector<1x1x1x8x128xf32>
    %146 = vector.shape_cast %145 : vector<1x1x1x8x128xf32> to vector<8x128xf32>
    %147 = vector.shape_cast %144 : vector<8x128xf32> to vector<1x1x1x8x128xf32>
    tpu.vector_store %arg7[%c0_131, %c0_132, %c2_133, %c0_134, %c0_135], %147 {strides = array<i32>} : memref<1x1x4x8x128xf32, #tpu.memory_space<vmem>>, vector<1x1x1x8x128xf32>,
    %148 = arith.subf %125, %129 : vector<8x128xf32>
    %149 = arith.mulf %148, %148 : vector<8x128xf32>
    %c0_136 = arith.constant 0 : index
    %c2_137 = arith.constant 2 : index
    %c0_138 = arith.constant 0 : index
    %c0_139 = arith.constant 0 : index
    %c0_140 = arith.constant 0 : index
    %150 = vector.load %arg5[%c0_136, %c2_137, %c0_138, %c0_139, %c0_140] : memref<1x4x1x8x128xbf16, #tpu.memory_space<vmem>>, vector<1x1x1x8x128xbf16>
    %151 = vector.shape_cast %150 : vector<1x1x1x8x128xbf16> to vector<8x128xbf16>
    %152 = arith.extf %151 : vector<8x128xbf16> to vector<8x128xf32>
    %153 = arith.mulf %149, %152 : vector<8x128xf32>
    %154 = arith.addf %120, %153 : vector<8x128xf32>
    %cst_141 = arith.constant 0.000000e+00 : f32
    %155 = vector.broadcast %cst_141 : f32 to vector<8x128xf32>
    %156 = arith.select %127, %125, %155 : vector<8x128xi1>, vector<8x128xf32>
    %157 = arith.subf %123, %156 : vector<8x128xf32>
    %c0_142 = arith.constant 0 : index
    %c3_143 = arith.constant 3 : index
    %c0_144 = arith.constant 0 : index
    %c0_145 = arith.constant 0 : index
    %c0_146 = arith.constant 0 : index
    %158 = vector.load %arg3[%c0_142, %c3_143, %c0_144, %c0_145, %c0_146] : memref<1x4x1x8x128xf32, #tpu.memory_space<vmem>>, vector<1x1x1x8x128xf32>
    %159 = vector.shape_cast %158 : vector<1x1x1x8x128xf32> to vector<8x128xf32>
    %c3_i32 = arith.constant 3 : i32
    %160 = vector.broadcast %c3_i32 : i32 to vector<8x128xi32>
    %161 = arith.cmpi eq, %4, %160 : vector<8x128xi32>
    %162 = arith.extui %161 : vector<8x128xi1> to vector<8x128xi32>
    %163 = arith.sitofp %162 : vector<8x128xi32> to vector<8x128xf32>
    %164 = arith.mulf %33, %55 : vector<8x128xf32>
    %c0_147 = arith.constant 0 : index
    %c0_148 = arith.constant 0 : index
    %c3_149 = arith.constant 3 : index
    %c0_150 = arith.constant 0 : index
    %c0_151 = arith.constant 0 : index
    %165 = vector.load %arg6[%c0_147, %c0_148, %c3_149, %c0_150, %c0_151] : memref<1x1x4x8x128xf32, #tpu.memory_space<vmem>>, vector<1x1x1x8x128xf32>
    %166 = vector.shape_cast %165 : vector<1x1x1x8x128xf32> to vector<8x128xf32>
    %167 = arith.mulf %164, %163 : vector<8x128xf32>
    %168 = vector.shape_cast %167 : vector<8x128xf32> to vector<1x8x128xf32>
    %cst_152 = arith.constant dense<0.000000e+00> : vector<8x128xf32>
    %169 = vector.multi_reduction <add>, %168, %cst_152 [0] : vector<1x8x128xf32> to vector<8x128xf32>
    %170 = arith.addf %166, %169 : vector<8x128xf32>
    %c0_153 = arith.constant 0 : index
    %c0_154 = arith.constant 0 : index
    %c3_155 = arith.constant 3 : index
    %c0_156 = arith.constant 0 : index
    %c0_157 = arith.constant 0 : index
    %171 = vector.load %arg6[%c0_153, %c0_154, %c3_155, %c0_156, %c0_157] : memref<1x1x4x8x128xf32, #tpu.memory_space<vmem>>, vector<1x1x1x8x128xf32>
    %172 = vector.shape_cast %171 : vector<1x1x1x8x128xf32> to vector<8x128xf32>
    %173 = vector.shape_cast %170 : vector<8x128xf32> to vector<1x1x1x8x128xf32>
    tpu.vector_store %arg6[%c0_153, %c0_154, %c3_155, %c0_156, %c0_157], %173 {strides = array<i32>} : memref<1x1x4x8x128xf32, #tpu.memory_space<vmem>>, vector<1x1x1x8x128xf32>,
    %c0_158 = arith.constant 0 : index
    %c0_159 = arith.constant 0 : index
    %c3_160 = arith.constant 3 : index
    %c0_161 = arith.constant 0 : index
    %c0_162 = arith.constant 0 : index
    %174 = vector.load %arg7[%c0_158, %c0_159, %c3_160, %c0_161, %c0_162] : memref<1x1x4x8x128xf32, #tpu.memory_space<vmem>>, vector<1x1x1x8x128xf32>
    %175 = vector.shape_cast %174 : vector<1x1x1x8x128xf32> to vector<8x128xf32>
    %176 = vector.shape_cast %164 : vector<8x128xf32> to vector<1x8x128xf32>
    %cst_163 = arith.constant dense<0.000000e+00> : vector<8x128xf32>
    %177 = vector.multi_reduction <add>, %176, %cst_163 [0] : vector<1x8x128xf32> to vector<8x128xf32>
    %178 = arith.addf %175, %177 : vector<8x128xf32>
    %c0_164 = arith.constant 0 : index
    %c0_165 = arith.constant 0 : index
    %c3_166 = arith.constant 3 : index
    %c0_167 = arith.constant 0 : index
    %c0_168 = arith.constant 0 : index
    %179 = vector.load %arg7[%c0_164, %c0_165, %c3_166, %c0_167, %c0_168] : memref<1x1x4x8x128xf32, #tpu.memory_space<vmem>>, vector<1x1x1x8x128xf32>
    %180 = vector.shape_cast %179 : vector<1x1x1x8x128xf32> to vector<8x128xf32>
    %181 = vector.shape_cast %178 : vector<8x128xf32> to vector<1x1x1x8x128xf32>
    tpu.vector_store %arg7[%c0_164, %c0_165, %c3_166, %c0_167, %c0_168], %181 {strides = array<i32>} : memref<1x1x4x8x128xf32, #tpu.memory_space<vmem>>, vector<1x1x1x8x128xf32>,
    %182 = arith.subf %159, %163 : vector<8x128xf32>
    %183 = arith.mulf %182, %182 : vector<8x128xf32>
    %c0_169 = arith.constant 0 : index
    %c3_170 = arith.constant 3 : index
    %c0_171 = arith.constant 0 : index
    %c0_172 = arith.constant 0 : index
    %c0_173 = arith.constant 0 : index
    %184 = vector.load %arg5[%c0_169, %c3_170, %c0_171, %c0_172, %c0_173] : memref<1x4x1x8x128xbf16, #tpu.memory_space<vmem>>, vector<1x1x1x8x128xbf16>
    %185 = vector.shape_cast %184 : vector<1x1x1x8x128xbf16> to vector<8x128xbf16>
    %186 = arith.extf %185 : vector<8x128xbf16> to vector<8x128xf32>
    %187 = arith.mulf %183, %186 : vector<8x128xf32>
    %188 = arith.addf %154, %187 : vector<8x128xf32>
    %cst_174 = arith.constant 0.000000e+00 : f32
    %189 = vector.broadcast %cst_174 : f32 to vector<8x128xf32>
    %190 = arith.select %161, %159, %189 : vector<8x128xi1>, vector<8x128xf32>
    %191 = arith.subf %157, %190 : vector<8x128xf32>
    %c0_175 = arith.constant 0 : index
    %c0_176 = arith.constant 0 : index
    %c0_177 = arith.constant 0 : index
    %c0_178 = arith.constant 0 : index
    %192 = vector.load %arg9[%c0_175, %c0_176, %c0_177, %c0_178] : memref<1x1x8x128xf32, #tpu.memory_space<vmem>>, vector<1x1x8x128xf32>
    %193 = vector.shape_cast %192 : vector<1x1x8x128xf32> to vector<8x128xf32>
    %194 = vector.shape_cast %188 : vector<8x128xf32> to vector<1x8x128xf32>
    %cst_179 = arith.constant dense<0.000000e+00> : vector<8x128xf32>
    %195 = vector.multi_reduction <add>, %194, %cst_179 [0] : vector<1x8x128xf32> to vector<8x128xf32>
    %196 = arith.addf %193, %195 : vector<8x128xf32>
    %c0_180 = arith.constant 0 : index
    %c0_181 = arith.constant 0 : index
    %c0_182 = arith.constant 0 : index
    %c0_183 = arith.constant 0 : index
    %197 = vector.load %arg9[%c0_180, %c0_181, %c0_182, %c0_183] : memref<1x1x8x128xf32, #tpu.memory_space<vmem>>, vector<1x1x8x128xf32>
    %198 = vector.shape_cast %197 : vector<1x1x8x128xf32> to vector<8x128xf32>
    %199 = vector.shape_cast %196 : vector<8x128xf32> to vector<1x1x8x128xf32>
    tpu.vector_store %arg9[%c0_180, %c0_181, %c0_182, %c0_183], %199 {strides = array<i32>} : memref<1x1x8x128xf32, #tpu.memory_space<vmem>>, vector<1x1x8x128xf32>,
    %c0_184 = arith.constant 0 : index
    %c0_185 = arith.constant 0 : index
    %c0_186 = arith.constant 0 : index
    %c0_187 = arith.constant 0 : index
    %200 = vector.load %arg8[%c0_184, %c0_185, %c0_186, %c0_187] : memref<1x1x8x128xf32, #tpu.memory_space<vmem>>, vector<1x1x8x128xf32>
    %201 = vector.shape_cast %200 : vector<1x1x8x128xf32> to vector<8x128xf32>
    %202 = vector.shape_cast %191 : vector<8x128xf32> to vector<1x8x128xf32>
    %cst_188 = arith.constant dense<0.000000e+00> : vector<8x128xf32>
    %203 = vector.multi_reduction <add>, %202, %cst_188 [0] : vector<1x8x128xf32> to vector<8x128xf32>
    %204 = arith.addf %201, %203 : vector<8x128xf32>
    %c0_189 = arith.constant 0 : index
    %c0_190 = arith.constant 0 : index
    %c0_191 = arith.constant 0 : index
    %c0_192 = arith.constant 0 : index
    %205 = vector.load %arg8[%c0_189, %c0_190, %c0_191, %c0_192] : memref<1x1x8x128xf32, #tpu.memory_space<vmem>>, vector<1x1x8x128xf32>
    %206 = vector.shape_cast %205 : vector<1x1x8x128xf32> to vector<8x128xf32>
    %207 = vector.shape_cast %204 : vector<8x128xf32> to vector<1x1x8x128xf32>
    tpu.vector_store %arg8[%c0_189, %c0_190, %c0_191, %c0_192], %207 {strides = array<i32>} : memref<1x1x8x128xf32, #tpu.memory_space<vmem>>, vector<1x1x8x128xf32>,
    return
  }
  func.func @transform_0(%arg0: i32, %arg1: i32, %arg2: i32) -> (i32, i32, i32, i32, i32) {
    %c2_i32 = arith.constant 2 : i32
    %0 = arith.muli %arg1, %c2_i32 : i32
    %1 = arith.addi %0, %arg2 : i32
    %c0_i32 = arith.constant 0 : i32
    %c0_i32_0 = arith.constant 0 : i32
    %c0_i32_1 = arith.constant 0 : i32
    %c0_i32_2 = arith.constant 0 : i32
    return %arg0, %c0_i32, %1, %c0_i32_0, %c0_i32_1 : i32, i32, i32, i32, i32
  }
  func.func @transform_1(%arg0: i32, %arg1: i32, %arg2: i32) -> (i32, i32, i32, i32) {
    %c2_i32 = arith.constant 2 : i32
    %0 = arith.muli %arg1, %c2_i32 : i32
    %1 = arith.addi %0, %arg2 : i32
    %c0_i32 = arith.constant 0 : i32
    %c0_i32_0 = arith.constant 0 : i32
    %c0_i32_1 = arith.constant 0 : i32
    return %arg0, %1, %c0_i32, %c0_i32_0 : i32, i32, i32, i32
  }
  func.func @transform_2(%arg0: i32, %arg1: i32, %arg2: i32) -> (i32, i32, i32, i32, i32) {
    %c2_i32 = arith.constant 2 : i32
    %0 = arith.muli %arg1, %c2_i32 : i32
    %1 = arith.addi %0, %arg2 : i32
    %c0_i32 = arith.constant 0 : i32
    %c0_i32_0 = arith.constant 0 : i32
    %c0_i32_1 = arith.constant 0 : i32
    %c0_i32_2 = arith.constant 0 : i32
    return %arg0, %c0_i32, %1, %c0_i32_0, %c0_i32_1 : i32, i32, i32, i32, i32
  }
  func.func @transform_3(%arg0: i32, %arg1: i32, %arg2: i32) -> (i32, i32, i32, i32, i32) {
    %c0_i32 = arith.constant 0 : i32
    %c0_i32_0 = arith.constant 0 : i32
    %c0_i32_1 = arith.constant 0 : i32
    %c0_i32_2 = arith.constant 0 : i32
    return %arg0, %arg1, %c0_i32, %c0_i32_0, %c0_i32_1 : i32, i32, i32, i32, i32
  }
  func.func @transform_4(%arg0: i32, %arg1: i32, %arg2: i32) -> (i32, i32, i32, i32, i32) {
    %c0_i32 = arith.constant 0 : i32
    %c0_i32_0 = arith.constant 0 : i32
    %c0_i32_1 = arith.constant 0 : i32
    %c0_i32_2 = arith.constant 0 : i32
    return %arg0, %arg1, %c0_i32, %c0_i32_0, %c0_i32_1 : i32, i32, i32, i32, i32
  }
  func.func @transform_5(%arg0: i32, %arg1: i32, %arg2: i32) -> (i32, i32, i32, i32) {
    %c0_i32 = arith.constant 0 : i32
    %c0_i32_0 = arith.constant 0 : i32
    %c0_i32_1 = arith.constant 0 : i32
    return %arg0, %arg1, %c0_i32, %c0_i32_0 : i32, i32, i32, i32
  }
  func.func @transform_6(%arg0: i32, %arg1: i32, %arg2: i32) -> (i32, i32, i32, i32) {
    %c0_i32 = arith.constant 0 : i32
    %c0_i32_0 = arith.constant 0 : i32
    %c0_i32_1 = arith.constant 0 : i32
    return %arg0, %arg1, %c0_i32, %c0_i32_0 : i32, i32, i32, i32
  }
}

</mosaic_0001>

<bundles_post_ra>
// kernel: tpu_custom_call.1
= control target key start
LH: loop header
LB: loop body
LE: loop exit
PB: predicated region body
PF: predicated region fallthrough
CT: control target
= control target key end

     0   :  { %s2165_s0 = inlined_call_operand.hbm [shape: f32[2,4,4,8,128], index: 0, kind: input, shape index: {}]   ;;  %s2166_s1 = inlined_call_operand.hbm [shape: s32[2,4,8,128], index: 1, kind: input, shape index: {}]   ;;  %s2167_s2 = inlined_call_operand.hbm [shape: bf16[2,4,4,8,128], index: 2, kind: input, shape index: {}]   ;;  %s2168_s3 = inlined_call_operand.hbm [shape: f32[2,2,4,8,128], index: 3, kind: output, shape index: {0}]   ;;  %s2169_s4 = inlined_call_operand.hbm [shape: f32[2,2,4,8,128], index: 4, kind: output, shape index: {1}]   ;;  %s2170_s5 = inlined_call_operand.hbm [shape: f32[2,2,8,128], index: 5, kind: output, shape index: {2}]   ;;  %s2171_s6 = inlined_call_operand.hbm [shape: f32[2,2,8,128], index: 6, kind: output, shape index: {3}]  }
   0x1   :  { %2187 = sst [smem:[#allocation30_spill]] %s2165_s0 }
   0x2   :  { %2188 = sst [smem:[#allocation31_spill]] %s2168_s3 }
   0x3   :  { %2189 = sst [smem:[#allocation32_spill]] %s2169_s4 }
   0x4   :  { %2190 = sst [smem:[#allocation33_spill]] %s2170_s5 }
   0x5   :  { %2191 = sst [smem:[#allocation34_spill]] %s2171_s6 }
   0x6   :  { %12 = vsyncpa [#allocation3], 0 }
   0x7   :  { %14 = vsyncpa [#allocation3 + $0x1], 0 }
   0x8   :  { %15 = vsyncpa [#allocation6], 0 }
   0x9   :  { %17 = vsyncpa [#allocation6 + $0x1], 0 }
   0xa   :  { %18 = vsyncpa [#allocation4], 0 }
   0xb   :  { %20 = vsyncpa [#allocation4 + $0x1], 0 }
   0xc   :  { %21 = vsyncpa [#allocation10], 0 }
   0xd   :  { %23 = vsyncpa [#allocation10 + $0x1], 0 }
   0xe   :  { %24 = vsyncpa [#allocation13], 0 }
   0xf   :  { %26 = vsyncpa [#allocation13 + $0x1], 0  ;;  %s1544_s21 = smov 0   ;;  %s1546_s22 = smov 0  }
  0x10   :  { %s1548_s23 = smov 0   ;;  %s1550_s24 = smov 0  }
  0x11   :  { %s1552_s25 = smov 0   ;;  %s1554_s26 = smov 0  }
  0x12   :  { %s1556_s27 = smov 0   ;;  %s1558_s28 = smov 0  }
  0x13   :  { %s1560_s29 = smov 0   ;;  %s1562_s30 = smov 0  }
  0x14   :  { %s1564_s7 = smov 0   ;;  %s1566_s8 = smov 0  }
  0x15   :  { %s1568_s9 = smov 0  }
  0x16 LB: > { %2192 = sst [smem:[#allocation19_spill]] %s1442_s21  ;;  %s1610_s10 = sadd.s32 4294967295, %s1490_s9   ;;  %s1490_s9 = sphi %s1568_s9, %s32_s9   ;;  %s1486_s8 = sphi %s1566_s8, %s2240_s8   ;;  %s1482_s7 = sphi %s1564_s7, %s2232_s7   ;;  %s1478_s30 = sphi %s1562_s30, %s2231_s30   ;;  %s1474_s29 = sphi %s1560_s29, %s2239_s29   ;;  %s1470_s28 = sphi %s1558_s28, %s2230_s28   ;;  %s1466_s27 = sphi %s1556_s27, %s2238_s27   ;;  %s1462_s26 = sphi %s1554_s26, %s2228_s26   ;;  %s1458_s25 = sphi %s1552_s25, %s2237_s25   ;;  %s1454_s24 = sphi %s1550_s24, %s2236_s24   ;;  %s1450_s23 = sphi %s1548_s23, %s2226_s23   ;;  %s1446_s22 = sphi %s1546_s22, %s2235_s22   ;;  %s1442_s21 = sphi %s1544_s21, %s2234_s21  }
  0x17   : > { %2193 = sst [smem:[#allocation20_spill]] %s1450_s23  ;;  %s44_s12 = sadd.s32 1, %s1478_s30 }
  0x18   : > { %2194 = sst [smem:[#allocation21_spill]] %s1462_s26  ;;  %s47_s13 = sadd.s32 1, %s1482_s7 }
  0x19   : > { %2195 = sst [smem:[#allocation22_spill]] %s1478_s30  ;;  %p45_p0 = scmp.ge.s32.totalorder %s44_s12, 2 }
  0x1a   : > { %2196 = sst [smem:[#allocation23_spill]] %s1482_s7  ;;  %s51_s14 = sadd.s32 1, %s1486_s8 }
  0x1b   : > { %s928_s15 = sshll.u32 %s1482_s7, 1  ;;  %s64_s16 = sadd.s32 1, %s1462_s26 }
  0x1c   : > { %s2242_s12 = smov (%p45_p0, %s44_s12), 0  ;;  %s2244_s13 = smov (!%p45_p0, %s47_s13), %s1482_s7 }
  0x1d   : > { %2197 = sst [smem:[#allocation24_spill]] %s2242_s12  ;;  %s1622_s17 = sadd.s32 %s1478_s30, %s928_s15 }
  0x1e   : > { %p71_p1 = scmp.ne.s32.totalorder %s1462_s26, %s1458_s25  ;;  %p49_p2 = scmp.ge.s32.totalorder %s2244_s13, 2 }
  0x1f   : > { %p72_p3 = scmp.eq.s32.totalorder %s1490_s9, 0  ;;  %p77_p4 = scmp.ne.s32.totalorder %s1458_s25, %s1454_s24 }
  0x20   : > { %p78_p5 = scmp.eq.s32.totalorder %s1610_s10, 0  ;;  %s2246_s13 = smov (%p49_p2, %s2244_s13), 0 }
  0x21   : > { %2198 = sst [smem:[#allocation25_spill]] %s2246_s13  ;;  %s2248_s14 = smov (!%p49_p2, %s51_s14), %s1486_s8 }
  0x22   : > { %s929_s18 = sshll.u32 %s2246_s13, 1  ;;  %p1634_p6 = por %p72_p3, %p71_p1 }
  0x23   : > { %p53_p7 = scmp.ge.s32.totalorder %s2248_s14, 2  ;;  %s58_s20 = sadd.s32 %s929_s18, %s2242_s12 }
  0x24   : > { %s60_s15 = ssub.s32 %s1622_s17, %s58_s20  ;;  %p1640_p8 = por %p78_p5, %p77_p4 }
  0x25   : > { %s2250_s14 = smov (%p53_p7, %s2248_s14), 0  ;;  %s152_s11 = ssub.s32 %s1482_s7, %s2246_s13 }
  0x26   : > { %s2200_s24 = scalar_select %p1640_p8, 1, 0 }
  0x27   : > { %2201 = sst [smem:[#allocation26_spill]] %s2250_s14  ;;  %s156_s30 = sadd.s32 1, %s1450_s23 }
  0x28   : > { %s59_s5 = ssub.s32 %s1486_s8, %s2250_s14  ;;  %p166_p9 = scmp.ne.s32.totalorder %s1450_s23, %s1446_s22 }
  0x29   : > { %s61_s3 = sor.u32 %s60_s15, %s59_s5  ;;  %s153_s18 = sor.u32 %s152_s11, %s59_s5 }
  0x2a   : > { %p62_p10 = scmp.eq.s32.totalorder %s61_s3, 0  ;;  %p154_p11 = scmp.eq.s32.totalorder %s153_s18, 0 }
  0x2b   : > { %p167_p12 = scmp.eq.s32.totalorder %s1610_s10, 7  ;;  %p172_p13 = scmp.ne.s32.totalorder %s1446_s22, %s1442_s21 }
  0x2c   : > { %s1657_s20 = scalar_select %p62_p10, %s1462_s26, %s64_s16  }
  0x2d   : > { %s1660_s12 = scalar_select %p154_p11, %s1450_s23, %s156_s30  }
  0x2e   : > { %2202 = sst [smem:[#allocation27_spill]] %s1657_s20  ;;  %p1662_p0 = por %p167_p12, %p166_p9 }
  0x2f   : > { %2203 = sst [smem:[#allocation28_spill]] %s1660_s12  ;;  %s2205_s14 = sadd.s32 4294967294, %s1490_s9  }
  0x30   : > { %s2204_s13 = scalar_select %p1662_p0, 1, 0 }
  0x31   : > { %p173_p1 = scmp.eq.s32.totalorder %s2205_s14, 7  ;;  %p1038_p2 = scmp.lt.s32.totalorder %s1490_s9, 8 }
  0x32   : > { %s1674_s3 = sand.u32 1, %s1462_s26   ;;  %s938_s16 = sshll.u32 %s1486_s8, 4 }
  0x33   : > { %p1669_p3 = por %p173_p1, %p172_p13  ;;  %s1679_s30 = sadd.s32 %s938_s16, %s1622_s17 }
  0x34   : > { %p1683_p4 = pnand %p1038_p2, %p1634_p6  ;;  %s939_s14 = sshll.u32 %s1679_s30, 7 }
  0x35   : > { %s2206_s5 = scalar_select %p1669_p3, 1, 0 }
  0x36   : > { %s301_s18 = sand.u32 1, %s1490_s9   ;;  %s2209_s0 = sld [smem:[#allocation30_spill]] }
  0x37   : > { %2207 = sst [smem:[#allocation29_spill]] %s2206_s5  ;;  %s940_s12 = sshll.u32 %s1674_s3, 3 }
  0x38   : > { %s942_s23 = sshll.u32 %s1486_s8, 2  ;;  %s305_s5 = scalar_lea.vmem [#allocation5], %s940_s12 }
  0x39   : > { %s312_s11 = sadd.s32 %s942_s23, %s1622_s17  ;;  %s316_s16 = sshll.u32 %s305_s5, 4  ;;  %s1697_s16 = int_to_ptr.vmem [resolvable:$true] %s316_s16 }
  0x3a   : > { %s943_s21 = sshll.u32 %s312_s11, 7  ;;  %s944_s7 = sshll.u32 %s1674_s3, 4 }
  0x3b   : > { %s1702_s6 = scalar_lea.hbm %s2166_s1, %s943_s21  ;;  %s1705_s20 = scalar_lea.sflag [#allocation6], %s301_s18 }
  0x3c   : > { %s1692_s26 = scalar_lea.hbm %s2209_s0, %s939_s14  ;;  %s1166_s14 = scalar_lea.hbm %s1702_s6, 128 }
  0x3d   : > { %p1167_p5 = scmp.ne.s32.totalorder %s1702_s6, %s1166_s14  ;;  %p1711_p6 = pneg %p1683_p4 }
  0x3e   : > { %s1171_s12 = scalar_lea.hbm %s2166_s1, 1024  ;;  %p1172_p10 = scmp.lt.u32.totalorder %s1702_s6, %s2166_s1 }
  0x3f   : > { %p1169_p7 = pnand %p1711_p6, %p1167_p5  ;;  %p1173_p11 = scmp.lt.u32.totalorder %s1171_s12, %s1166_s14 }
  0x40   : > { %p1175_p13 = scmp.lt.u32.totalorder %s1166_s14, %s1702_s6 }
  0x41   : > { %p1170_p9 = pneg %p1169_p7  ;;  %p1174_p12 = por %p1173_p11, %p1172_p10 }
  0x43   : > { %p1176_p1 = por %p1175_p13, %p1174_p12 }
  0x45   : > { %p1177_p2 = pnand %p1176_p1, %p1170_p9 }
  0x47   : > { %1180 = shalt.err (!%p1177_p2)
}
  0x48   : > { %s1181_s11 = scalar_lea.vmem %s1697_s16, 128  ;;  %s1492_s18 = smov [#allocation5]  }
  0x49   : > { %p1182_p5 = scmp.ne.s32.totalorder %s1697_s16, %s1181_s11  ;;  %s1186_s19 = sshll.u32 %s1492_s18, 4  ;;  %s1187_s19 = int_to_ptr.vmem [resolvable:$false] %s1186_s19 }
  0x4a   : > { %s1188_s4 = scalar_lea.vmem %s1187_s19, 256  ;;  %p1189_p0 = scmp.lt.s32.totalorder %s1697_s16, %s1187_s19 }
  0x4b   : > { %p1184_p7 = pnand %p1182_p5, %p1711_p6  ;;  %p1190_p8 = scmp.lt.s32.totalorder %s1188_s4, %s1181_s11 }
  0x4d   : > { %p1185_p3 = pneg %p1184_p7  ;;  %p1191_p10 = por %p1190_p8, %p1189_p0 }
  0x4f   : > { %p1192_p11 = pnand %p1191_p10, %p1185_p3 }
  0x51   : > { %1195 = shalt.err (!%p1192_p11)
}
  0x52   : > { %1021 = dma.hbm_to_vmem [thread:$0]  (!%p1683_p4), %s1702_s6, 128, %s1697_s16, %s1705_s20  }
  0x53   : > { %s947_s14 = sshll.u32 %s1679_s30, 6  ;;  %s327_s5 = scalar_lea.vmem [#allocation7], %s944_s7 }
  0x54   : > { %s1739_s17 = scalar_lea.hbm %s2167_s2, %s947_s14  ;;  %s337_s11 = sshll.u32 %s327_s5, 4  ;;  %s1743_s11 = int_to_ptr.vmem [resolvable:$true] %s337_s11 }
  0x55   : > { %p948_p8 = scmp.ge.s32.totalorder %s1490_s9, 1  ;;  %p345_p0 = scmp.lt.s32.totalorder %s1490_s9, 9 }
  0x56   : > { %s2212_s6 = sshll.u32 %s1674_s3, 5  ;;  %s278_s19 = scalar_lea.sflag [#allocation3], %s1674_s3 }
  0x57   : > { %p1747_p3 = pnand %p948_p8, %p345_p0  ;;  %s281_s30 = scalar_lea.vmem [#allocation2], %s2212_s6 }
  0x58   : > { %s291_s16 = sshll.u32 %s281_s30, 4  ;;  %s1196_s4 = scalar_lea.hbm %s1692_s26, 512  ;;  %s1753_s16 = int_to_ptr.vmem [resolvable:$true] %s291_s16 }
  0x59   : > { %s2211_s18 = scalar_select %p1747_p3, 1, 0 }
  0x5a   : > { %p1197_p9 = scmp.ne.s32.totalorder %s1692_s26, %s1196_s4  ;;  %s1201_s21 = scalar_lea.hbm %s2209_s0, 4096 }
  0x5b   : > { %p1202_p1 = scmp.lt.u32.totalorder %s1692_s26, %s2209_s0  ;;  %p1203_p2 = scmp.lt.u32.totalorder %s1201_s21, %s1196_s4 }
  0x5c   : > { %p1199_p12 = pnand %p1197_p9, %p1711_p6  ;;  %p1205_p7 = scmp.lt.u32.totalorder %s1196_s4, %s1692_s26 }
  0x5d   : > { %p1204_p5 = por %p1203_p2, %p1202_p1 }
  0x5e   : > { %p1200_p13 = pneg %p1199_p12 }
  0x5f   : > { %p1206_p10 = por %p1205_p7, %p1204_p5 }
  0x61   : > { %p1207_p11 = pnand %p1206_p10, %p1200_p13 }
  0x63   : > { %1210 = shalt.err (!%p1207_p11)
}
  0x64   : > { %s1211_s6 = scalar_lea.vmem %s1753_s16, 512  ;;  %s1493_s30 = smov [#allocation2]  }
  0x65   : > { %p1212_p8 = scmp.ne.s32.totalorder %s1753_s16, %s1211_s6  ;;  %s1216_s7 = sshll.u32 %s1493_s30, 4  ;;  %s1217_s7 = int_to_ptr.vmem [resolvable:$false] %s1216_s7 }
  0x66   : > { %s1218_s14 = scalar_lea.vmem %s1217_s7, 1024  ;;  %p1219_p12 = scmp.lt.s32.totalorder %s1753_s16, %s1217_s7 }
  0x67   : > { %p1214_p0 = pnand %p1212_p8, %p1711_p6  ;;  %p1220_p3 = scmp.lt.s32.totalorder %s1218_s14, %s1211_s6 }
  0x69   : > { %p1215_p9 = pneg %p1214_p0  ;;  %p1221_p1 = por %p1220_p3, %p1219_p12 }
  0x6b   : > { %p1222_p2 = pnand %p1221_p1, %p1215_p9 }
  0x6d   : > { %1225 = shalt.err (!%p1222_p2)
}
  0x6e   : > { %s1494_s4 = smov 512   ;;  %s1495_s21 = smov 128  }
  0x6f   : > { %s1496_s12 = smov 8   ;;  %s1226_s5 = scalar_lea.hbm %s1739_s17, 256 }
  0x70   : > { %1018 = dma.hbm_to_vmem [thread:$0]  (!%p1683_p4), %s1692_s26, 512, %s1753_s16, %s278_s19, %s1494_s4, %s1495_s21, %s1496_s12  }
  0x71   : > { %p1227_p13 = scmp.ne.s32.totalorder %s1739_s17, %s1226_s5  ;;  %s1231_s7 = scalar_lea.hbm %s2167_s2, 2048 }
  0x72   : > { %p1232_p7 = scmp.lt.u32.totalorder %s1739_s17, %s2167_s2  ;;  %p1233_p10 = scmp.lt.u32.totalorder %s1231_s7, %s1226_s5 }
  0x73   : > { %p1229_p3 = pnand %p1227_p13, %p1711_p6  ;;  %p1235_p8 = scmp.lt.u32.totalorder %s1226_s5, %s1739_s17 }
  0x74   : > { %p1234_p11 = por %p1233_p10, %p1232_p7 }
  0x75   : > { %p1230_p5 = pneg %p1229_p3 }
  0x76   : > { %p1236_p0 = por %p1235_p8, %p1234_p11 }
  0x78   : > { %p1237_p9 = pnand %p1236_p0, %p1230_p5 }
  0x7a   : > { %1240 = shalt.err (!%p1237_p9)
}
  0x7b   : > { %s1241_s26 = scalar_lea.vmem %s1743_s11, 256  ;;  %s1497_s3 = smov [#allocation7]  }
  0x7c   : > { %p1242_p12 = scmp.ne.s32.totalorder %s1743_s11, %s1241_s26  ;;  %s1246_s16 = sshll.u32 %s1497_s3, 4  ;;  %s1247_s16 = int_to_ptr.vmem [resolvable:$false] %s1246_s16 }
  0x7d   : > { %s1248_s0 = scalar_lea.vmem %s1247_s16, 512  ;;  %p1249_p13 = scmp.lt.s32.totalorder %s1743_s11, %s1247_s16 }
  0x7e   : > { %p1244_p1 = pnand %p1242_p12, %p1711_p6  ;;  %p1250_p3 = scmp.lt.s32.totalorder %s1248_s0, %s1241_s26 }
  0x80   : > { %p1245_p2 = pneg %p1244_p1  ;;  %p1251_p7 = por %p1250_p3, %p1249_p13 }
  0x82   : > { %p1252_p10 = pnand %p1251_p7, %p1245_p2 }
  0x84   : > { %1255 = shalt.err (!%p1252_p10)
}
  0x85   : > { %s1498_s19 = smov 256   ;;  %s1499_s4 = smov 64  }
  0x86   : > { %s1500_s21 = smov 4   ;;  %p2213_p6 = scmp.ne.s32.totalorder %s2211_s18, 0 }
  0x87   : > { %1024 = dma.hbm_to_vmem [thread:$0]  (!%p1683_p4), %s1739_s17, 256, %s1743_s11, %s1705_s20, %s1498_s19, %s1499_s4, %s1500_s21  }
  0x88   : > { %349 = sbr.rel (%p2213_p6) target bundleno = 292 (0x124), region = 32  ;;  %s351_s23 = sand.u32 (!%p2213_p6), 1, %s1458_s25  }
  0x89   : > { %s949_s12 = sshll.u32 (!%p2213_p6), %s351_s23, 5  ;;  %s352_s5 = scalar_lea.sflag (!%p2213_p6), [#allocation3], %s351_s23 }
  0x8a   : > { %s1804_s6 = scalar_lea.vmem (!%p2213_p6), [#allocation2], %s949_s12  ;;  %p2214_p5 = scmp.ne.s32.totalorder (!%p2213_p6), %s2200_s24, 0 }
  0x8f   : > { %1421 = dma.done.wait (%p2214_p5), %s352_s5, 512  }
  0x90   : > { %1423 = vsyncadd (%p2214_p5), %s352_s5, 4294966784  ;;  %s360_s15 = sand.u32 1, %s1610_s10   ;;  %s950_s20 = sshll.u32 %s351_s23, 3 }
  0x91   : > { %s361_s17 = scalar_lea.sflag [#allocation6], %s360_s15  ;;  %s1813_s11 = scalar_lea.vmem [#allocation5], %s950_s20 }
  0x92   : > { %1425 = dma.done.wait (%p2214_p5), %s361_s17, 384  }
  0x93   : > { %1427 = vsyncadd (%p2214_p5), %s361_s17, 4294966912  ;;  %s951_s18 = sshll.u32 %s351_s23, 4  ;;  %s1820_s30 = sand.u32 1, %s1446_s22  }
  0x94   : > { %s952_s7 = sshll.u32 %s1820_s30, 5  ;;  %s954_s14 = sshll.u32 %s1820_s30, 3 }
  0x95   : > { %s1824_s26 = scalar_lea.vmem [#allocation7], %s951_s18  ;;  %s1826_s3 = scalar_lea.vmem [#allocation8], %s952_s7 }
  0x96   : > { %s1828_s16 = scalar_lea.vmem [#allocation9], %s952_s7  ;;  %s1830_s0 = scalar_lea.vmem [#allocation11], %s954_s14 }
  0x97   : > { %s1832_s19 = scalar_lea.vmem [#allocation12], %s954_s14  ;;  %p956_p4 = scmp.ne.s32.totalorder %s1466_s27, 0 }
  0x98   : > { %v1501_v0 = vmov (!%p956_p4), 0.0  }
  0x99   : > { %436 = sbr.rel (%p956_p4) target bundleno = 160 (0xa0), region = 48  ;;  %437 = vst [vmem:[%s1826_s3] sm:$0xff] (!%p956_p4), %v1501_v0  ;;  %438 = vst [vmem:[%s1826_s3 + $0x8] sm:$0xff] (!%p956_p4), %v1501_v0 }
  0x9a   : > { %439 = vst [vmem:[%s1826_s3 + $0x10] sm:$0xff] (!%p956_p4), %v1501_v0  ;;  %440 = vst [vmem:[%s1826_s3 + $0x18] sm:$0xff] (!%p956_p4), %v1501_v0 }
  0x9b   : > { %441 = vst [vmem:[%s1828_s16] sm:$0xff] (!%p956_p4), %v1501_v0  ;;  %442 = vst [vmem:[%s1828_s16 + $0x8] sm:$0xff] (!%p956_p4), %v1501_v0 }
  0x9c   : > { %443 = vst [vmem:[%s1828_s16 + $0x10] sm:$0xff] (!%p956_p4), %v1501_v0  ;;  %444 = vst [vmem:[%s1828_s16 + $0x18] sm:$0xff] (!%p956_p4), %v1501_v0 }
  0x9d   : > { %445 = vst [vmem:[%s1830_s0] sm:$0xff] (!%p956_p4), %v1501_v0  ;;  %446 = vst [vmem:[%s1832_s19] sm:$0xff] (!%p956_p4), %v1501_v0 }
  0xa0 PF: > { %v1846_v1 = vld [vmem:[%s1804_s6] sm:$0xff]  ;;  %v1849_v2 = vld [vmem:[%s1804_s6 + $0x8] sm:$0xff]  ;;  %v1852_v3 = vld [vmem:[%s1804_s6 + $0x10] sm:$0xff]  ;;  %v1502_v9 = vmov 0.0   ;;  %s995_s24 = sshll.u32 %s1474_s29, 1  ;;  %s681_s23 = sshll.u32 %s1832_s19, 4  ;;  %v484_v49 = vlaneseq  ;;  %s1926_s23 = int_to_ptr.vmem [resolvable:$true] %s681_s23 }
  0xa1   : > { %v451_v4 = vmax.f32 %v1846_v1, %v1849_v2  ;;  %v1857_v5 = vld [vmem:[%s1804_s6 + $0x18] sm:$0xff]  ;;  %v1860_v6 = vld [vmem:[%s1813_s11] sm:$0xff]  ;;  %v511_v8 = vld [vmem:[%s1824_s26] sm:$0xff]   ;;  %s1910_s4 = sadd.s32 %s1470_s28, %s995_s24  ;;  %s2215_s6 = sld [smem:[#allocation34_spill]] }
  0xa2   : > { %vm496_vm0 = vcmp.eq.s32.totalorder %v1860_v6, 0  ;;  %vm517_vm1 = vcmp.eq.s32.totalorder %v1860_v6, 1  ;;  %v512_v14 = vunpack.c.l.bf16 %v511_v8  ;;  %v536_v16 = vunpack.c.h.bf16 %v511_v8  ;;  %v977_v23 = vld [vmem:[%s1824_s26 + $0x8] sm:$0xff]   ;;  %s996_s21 = sshll.u32 %s1910_s4, 7  ;;  %s960_s17 = sshll.u32 %s1470_s28, 1 }
  0xa3   : > { %v454_v7 = vmax.f32 %v451_v4, %v1852_v3  ;;  %v1869_v10 = vsel %vm496_vm0, 1.0, %v1502_v9  ;;  %v1879_v13 = vsel %vm517_vm1, 1.0, %v1502_v9  ;;  %vm542_vm2 = vcmp.eq.s32.totalorder %v1860_v6, 2  ;;  %s615_s11 = scalar_lea.sflag [#allocation13], %s1820_s30  ;;  %s1256_s18 = scalar_lea.vmem %s1926_s23, 128 }
  0xa4   : > { %v509_v12 = vsub.f32 %v1846_v1, %v1869_v10  ;;  %v532_v15 = vsub.f32 %v1849_v2, %v1879_v13  ;;  %v1896_v30 = vsel %vm542_vm2, 1.0, %v1502_v9  ;;  %vm567_vm3 = vcmp.eq.s32.totalorder %v1860_v6, 3  ;;  %v591_v42 = vld [vmem:[%s1832_s19] sm:$0xff]  ;;  %p1257_p11 = scmp.ne.s32.totalorder %s1926_s23, %s1256_s18  ;;  %p2216_p8 = scmp.ne.s32.totalorder %s2204_s13, 0 }
  0xa5   : > { %v1872_v11 = vmax.f32 %v454_v7, %v1857_v5  ;;  %v557_v31 = vsub.f32 %v1852_v3, %v1896_v30  ;;  %v1904_v32 = vsel %vm567_vm3, 1.0, %v1502_v9  ;;  %v561_v33 = vunpack.c.l.bf16 %v977_v23  ;;  %s1503_s7 = smov [#allocation12]  }
  0xa6   : > { %v510_v21 = vmul.f32 %v509_v12, %v509_v12  ;;  %v533_v22 = vmul.f32 %v532_v15, %v532_v15  ;;  %v582_v34 = vsub.f32 %v1857_v5, %v1904_v32  ;;  %v586_v35 = vunpack.c.h.bf16 %v977_v23  ;;  %p1258_p0 = pnand %p1257_p11, %p2216_p8  ;;  %s1260_s14 = sshll.u32 %s1503_s7, 4  ;;  %s1261_s14 = int_to_ptr.vmem [resolvable:$false] %s1260_s14 }
  0xa7   : > { %v458_v17 = vsub.f32 %v1846_v1, %v1872_v11  ;;  %v461_v18 = vsub.f32 %v1849_v2, %v1872_v11  ;;  %v465_v19 = vsub.f32 %v1852_v3, %v1872_v11  ;;  %v469_v20 = vsub.f32 %v1857_v5, %v1872_v11  ;;  %s1924_s20 = scalar_lea.hbm %s2215_s6, %s996_s21  ;;  %s1262_s26 = scalar_lea.vmem %s1261_s14, 256 }
  0xa8   : > { %v513_v28 = vmul.f32 %v512_v14, %v510_v21  ;;  %v537_v29 = vmul.f32 %v536_v16, %v533_v22  ;;  %v558_v36 = vmul.f32 %v557_v31, %v557_v31  ;;  %v583_v38 = vmul.f32 %v582_v34, %v582_v34  ;;  %p1259_p9 = pneg %p1258_p0  ;;  %p1263_p12 = scmp.lt.s32.totalorder %s1926_s23, %s1261_s14 }
  0xa9   : > { %v459_v24 = vmul.f32 1.442695, %v458_v17  ;;  %v462_v25 = vmul.f32 1.442695, %v461_v18  ;;  %v466_v26 = vmul.f32 1.442695, %v465_v19  ;;  %p1264_p1 = scmp.lt.s32.totalorder %s1262_s26, %s1256_s18 }
  0xaa   : > { %v470_v27 = vmul.f32 1.442695, %v469_v20  ;;  %v538_v37 = vadd.f32 %v537_v29, %v513_v28  ;;  %v562_v39 = vmul.f32 %v561_v33, %v558_v36  ;;  %v587_v40 = vmul.f32 %v586_v35, %v583_v38 }
  0xab   : > { %1154 = vpow2.f32 %v459_v24  ;;  %p1265_p2 = por %p1264_p1, %p1263_p12 }
  0xac   : > { %1156 = vpow2.f32 %v462_v25  ;;  %v563_v41 = vadd.f32 %v562_v39, %v538_v37 }
  0xad   : > { %1158 = vpow2.f32 %v466_v26  ;;  %p1266_p13 = pnand %p1265_p2, %p1259_p9 }
  0xae   : > { %1160 = vpow2.f32 %v470_v27  ;;  %v588_v43 = vadd.f32 %v587_v40, %v563_v41 }
  0xb0   : > { %v593_v46 = vadd.f32 %v591_v42, %v588_v43 }
  0xb2   : > { %594 = vst [vmem:[%s1832_s19] sm:$0xff] %v593_v46 }
  0xb5   : > { %v1915_v44 = vpop.eup %1154 }
  0xb6   : > { %v1917_v45 = vpop.eup %1156 }
  0xb7   : > { %v1928_v47 = vpop.eup %1158  ;;  %v464_v48 = vadd.f32 %v1917_v45, %v1915_v44 }
  0xb8   : > { %v1932_v50 = vpop.eup %1160 }
  0xb9   : > { %v468_v51 = vadd.f32 %v1928_v47, %v464_v48 }
  0xba   : > { %1269 = shalt.err (!%p1266_p13)
}
  0xbb   : > { %s1270_s19 = scalar_lea.hbm %s1924_s20, 128  ;;  %s1274_s5 = scalar_lea.hbm %s2215_s6, 512 }
  0xbc   : > { %p1271_p3 = scmp.ne.s32.totalorder %s1924_s20, %s1270_s19  ;;  %p1275_p6 = scmp.lt.u32.totalorder %s1924_s20, %s2215_s6 }
  0xbd   : > { %p1276_p5 = scmp.lt.u32.totalorder %s1274_s5, %s1270_s19  ;;  %p1278_p11 = scmp.lt.u32.totalorder %s1270_s19, %s1924_s20 }
  0xbe   : > { %p1272_p7 = pnand %p1271_p3, %p2216_p8 }
  0xbf   : > { %p1277_p4 = por %p1276_p5, %p1275_p6 }
  0xc0   : > { %p1273_p10 = pneg %p1272_p7 }
  0xc1   : > { %p1279_p0 = por %p1278_p11, %p1277_p4 }
  0xc3   : > { %p1280_p9 = pnand %p1279_p0, %p1273_p10 }
  0xc5   : > { %1283 = shalt.err (!%p1280_p9)
}
  0xc6   : > { %1010 = dma.vmem_to_hbm [thread:$0]  (%p2216_p8), %s1926_s23, 128, %s1924_s20, %s615_s11   ;;  %v472_v52 = vadd.f32 %v1932_v50, %v468_v51  ;;  %v485_v53 = vshrl.u32 %v484_v49, 7  ;;  %v488_v55 = vand.u32 127, %v484_v49  ;;  %v514_v7 = vsel %vm496_vm0, %v1846_v1, 0.0  ;;  %v505_v14 = vld [vmem:[%s1828_s16] sm:$0xff]  ;;  %v975_v16 = vld [vmem:[%s1828_s16 + $0x10] sm:$0xff] }
  0xc7   : > { %s481_s18 = sadd.s32 %s1466_s27, %s960_s17  ;;  %s989_s27 = sshll.u32 %s1470_s28, 2  ;;  %v539_v15 = vsel %vm517_vm1, %v1849_v2, 0.0  ;;  %v500_v21 = vld [vmem:[%s1826_s3] sm:$0xff]  ;;  %v564_v2 = vsel %vm542_vm2, %v1852_v3, 0.0  ;;  %v589_v23 = vsel %vm567_vm3, %v1857_v5, 0.0  ;;  %v966_v28 = vld [vmem:[%s1826_s3 + $0x8] sm:$0xff] }
  0xc8   : > { %1162 = vrcp.f32 %v472_v52  ;;  %s961_s26 = sshll.u32 %s481_s18, 10  ;;  %v486_v54 = vmul.u32 128, %v485_v53  ;;  %s990_s23 = sshll.u32 %s1474_s29, 3  ;;  %v973_v29 = vld [vmem:[%s1826_s3 + $0x10] sm:$0xff]  ;;  %v980_v31 = vld [vmem:[%s1826_s3 + $0x18] sm:$0xff]  ;;  %v595_v34 = vld [vmem:[%s1830_s0] sm:$0xff] }
  0xc9   : > { %1164 = vlog2.f32 %v472_v52  ;;  %s483_s19 = ssub.s32 3200, %s961_s26  ;;  %s1970_s20 = sadd.s32 %s990_s23, %s989_s27 }
  0xca   : > { %v489_v56 = vadd.s32 %v488_v55, %v486_v54  ;;  %v490_v57 = vstv %s483_s19  ;;  %s991_s28 = sshll.u32 %s1970_s20, 7  ;;  %s648_s29 = sshll.u32 %s1828_s16, 4  ;;  %s2001_s29 = int_to_ptr.vmem [resolvable:$true] %s648_s29 }
  0xcb   : > { %s630_s17 = sshll.u32 %s1826_s3, 4  ;;  %s2217_s12 = sld [smem:[#allocation32_spill]]  ;;  %s2017_s17 = int_to_ptr.vmem [resolvable:$true] %s630_s17 }
  0xcc   : > { %vm491_vm4 = vcmp.lt.s32.totalorder %v489_v56, %v490_v57  ;;  %s2218_s18 = sld [smem:[#allocation31_spill]]  ;;  %s666_s19 = sshll.u32 %s1830_s0, 4  ;;  %s2062_s19 = int_to_ptr.vmem [resolvable:$true] %s666_s19 }
  0xcd   : > { %v962_v63 = vsel %vm491_vm4, 1.0, %v1502_v9  ;;  %v968_v9 = vld [vmem:[%s1828_s16 + $0x8] sm:$0xff]  ;;  %s2022_s27 = scalar_lea.sflag [#allocation10], %s360_s15  ;;  %s1284_s23 = scalar_lea.vmem %s2001_s29, 512 }
  0xce   : > { %p1285_p12 = scmp.ne.s32.totalorder %s2001_s29, %s1284_s23  ;;  %s1504_s20 = smov [#allocation9]  }
  0xd0   : > { %p1286_p1 = pnand %p1285_p12, %p2216_p8 }
  0xd1   : > { %s1999_s5 = scalar_lea.hbm %s2217_s12, %s991_s28 }
  0xd2   : > { %v1163_v58 = vpop.eup %1162  ;;  %s2010_s26 = scalar_lea.hbm %s2218_s18, %s991_s28  ;;  %p1287_p2 = pneg %p1286_p1 }
  0xd3   : > { %v1165_v59 = vpop.eup %1164  ;;  %v474_v60 = vmul.f32 %v1163_v58, %v472_v52 }
  0xd4   : > { %v478_v61 = vmul.f32 0.6931472, %v1165_v59 }
  0xd5   : > { %v475_v62 = vsub.f32 2.0, %v474_v60 }
  0xd6   : > { %v479_v0 = vadd.f32 %v478_v61, %v1872_v11  ;;  %v982_v11 = vld [vmem:[%s1828_s16 + $0x18] sm:$0xff] }
  0xd7   : > { %v476_v4 = vmul.f32 %v1163_v58, %v475_v62 }
  0xd8   : > { %v495_v8 = vmul.f32 %v962_v63, %v479_v0 }
  0xd9   : > { %v494_v12 = vmul.f32 %v962_v63, %v476_v4 }
  0xda   : > { %v515_v17 = vsub.f32 %v495_v8, %v514_v7 }
  0xdb   : > { %v499_v1 = vmul.f32 %v1915_v44, %v494_v12  ;;  %v520_v18 = vmul.f32 %v1917_v45, %v494_v12  ;;  %v545_v19 = vmul.f32 %v1928_v47, %v494_v12  ;;  %v570_v20 = vmul.f32 %v1932_v50, %v494_v12 }
  0xdc   : > { %v540_v22 = vsub.f32 %v515_v17, %v539_v15 }
  0xdd   : > { %v507_v24 = vadd.f32 %v505_v14, %v499_v1  ;;  %v530_v25 = vadd.f32 %v968_v9, %v520_v18  ;;  %v555_v26 = vadd.f32 %v975_v16, %v545_v19  ;;  %v580_v27 = vadd.f32 %v982_v11, %v570_v20 }
  0xde   : > { %v501_v3 = vmul.f32 %v1869_v10, %v499_v1  ;;  %v523_v5 = vmul.f32 %v1879_v13, %v520_v18  ;;  %v548_v6 = vmul.f32 %v1896_v30, %v545_v19  ;;  %v573_v33 = vmul.f32 %v1904_v32, %v570_v20 }
  0xdf   : > { %508 = vst [vmem:[%s1828_s16] sm:$0xff] %v507_v24  ;;  %969 = vst [vmem:[%s1828_s16 + $0x8] sm:$0xff] %v530_v25  ;;  %v565_v10 = vsub.f32 %v540_v22, %v564_v2 }
  0xe0   : > { %976 = vst [vmem:[%s1828_s16 + $0x10] sm:$0xff] %v555_v26  ;;  %983 = vst [vmem:[%s1828_s16 + $0x18] sm:$0xff] %v580_v27  ;;  %v503_v13 = vadd.f32 %v501_v3, %v500_v21  ;;  %v525_v30 = vadd.f32 %v966_v28, %v523_v5  ;;  %v550_v32 = vadd.f32 %v973_v29, %v548_v6  ;;  %s1288_s16 = sshll.u32 %s1504_s20, 4  ;;  %s1289_s16 = int_to_ptr.vmem [resolvable:$false] %s1288_s16 }
  0xe1   : > { %v575_v35 = vadd.f32 %v980_v31, %v573_v33  ;;  %s1290_s28 = scalar_lea.vmem %s1289_s16, 1024  ;;  %p1291_p13 = scmp.lt.s32.totalorder %s2001_s29, %s1289_s16 }
  0xe2   : > { %p1292_p3 = scmp.lt.s32.totalorder %s1290_s28, %s1284_s23 }
  0xe4   : > { %p1293_p7 = por %p1292_p3, %p1291_p13 }
  0xe6   : > { %p1294_p10 = pnand %p1293_p7, %p1287_p2 }
  0xe8   : > { %1297 = shalt.err (!%p1294_p10)
}
  0xe9   : > { %s1298_s10 = scalar_lea.hbm %s1999_s5, 512  ;;  %s1302_s24 = scalar_lea.hbm %s2217_s12, 2048 }
  0xea   : > { %p1299_p6 = scmp.ne.s32.totalorder %s1999_s5, %s1298_s10  ;;  %p1303_p11 = scmp.lt.u32.totalorder %s1999_s5, %s2217_s12 }
  0xeb   : > { %p1304_p0 = scmp.lt.u32.totalorder %s1302_s24, %s1298_s10  ;;  %p1306_p12 = scmp.lt.u32.totalorder %s1298_s10, %s1999_s5 }
  0xec   : > { %p1300_p5 = pnand %p1299_p6, %p2216_p8 }
  0xed   : > { %p1305_p9 = por %p1304_p0, %p1303_p11 }
  0xee   : > { %p1301_p4 = pneg %p1300_p5 }
  0xef   : > { %p1307_p1 = por %p1306_p12, %p1305_p9 }
  0xf1   : > { %p1308_p2 = pnand %p1307_p1, %p1301_p4 }
  0xf3   : > { %1311 = shalt.err (!%p1308_p2)
}
  0xf4   : > { %s1505_s23 = smov 128   ;;  %s1506_s20 = smov 8   ;;  %v590_v36 = vsub.f32 %v565_v10, %v589_v23  ;;  %504 = vst [vmem:[%s1826_s3] sm:$0xff] %v503_v13  ;;  %967 = vst [vmem:[%s1826_s3 + $0x8] sm:$0xff] %v525_v30 }
  0xf5   : > { %1008 = dma.vmem_to_hbm [thread:$0]  (%p2216_p8), %s2001_s29, 512, %s1999_s5, %s2022_s27, %s1505_s23, %s1505_s23, %s1506_s20  }
  0xf6   : > { %974 = vst [vmem:[%s1826_s3 + $0x10] sm:$0xff] %v550_v32  ;;  %981 = vst [vmem:[%s1826_s3 + $0x18] sm:$0xff] %v575_v35  ;;  %s2219_s10 = sld [smem:[#allocation33_spill]]  ;;  %v597_v37 = vadd.f32 %v595_v34, %v590_v36  ;;  %s600_s11 = scalar_lea.sflag [#allocation4], %s1820_s30 }
  0xf7   : > { %s1312_s24 = scalar_lea.vmem %s2017_s17, 512  ;;  %s1507_s29 = smov [#allocation8]  }
  0xf8   : > { %p1313_p13 = scmp.ne.s32.totalorder %s2017_s17, %s1312_s24  ;;  %s1316_s5 = sshll.u32 %s1507_s29, 4  ;;  %s1317_s5 = int_to_ptr.vmem [resolvable:$false] %s1316_s5 }
  0xf9   : > { %s1318_s3 = scalar_lea.vmem %s1317_s5, 1024  ;;  %p1319_p10 = scmp.lt.s32.totalorder %s2017_s17, %s1317_s5 }
  0xfa   : > { %p1314_p3 = pnand %p1313_p13, %p2216_p8  ;;  %p1320_p6 = scmp.lt.s32.totalorder %s1318_s3, %s1312_s24 }
  0xfc   : > { %s2058_s15 = scalar_lea.hbm %s2219_s10, %s996_s21  ;;  %p1315_p7 = pneg %p1314_p3 }
  0xfd   : > { %p1321_p5 = por %p1320_p6, %p1319_p10 }
  0xff   : > { %p1322_p4 = pnand %p1321_p5, %p1315_p7 }
 0x101   : > { %1325 = shalt.err (!%p1322_p4)
}
 0x102   : > { %s1326_s4 = scalar_lea.hbm %s2010_s26, 512  ;;  %s1330_s14 = scalar_lea.hbm %s2218_s18, 2048 }
 0x103   : > { %p1327_p11 = scmp.ne.s32.totalorder %s2010_s26, %s1326_s4  ;;  %p1331_p12 = scmp.lt.u32.totalorder %s2010_s26, %s2218_s18 }
 0x104   : > { %p1332_p1 = scmp.lt.u32.totalorder %s1330_s14, %s1326_s4  ;;  %p1334_p13 = scmp.lt.u32.totalorder %s1326_s4, %s2010_s26 }
 0x105   : > { %p1328_p0 = pnand %p1327_p11, %p2216_p8 }
 0x106   : > { %p1333_p2 = por %p1332_p1, %p1331_p12 }
 0x107   : > { %p1329_p9 = pneg %p1328_p0 }
 0x108   : > { %p1335_p3 = por %p1334_p13, %p1333_p2 }
 0x10a   : > { %p1336_p7 = pnand %p1335_p3, %p1329_p9 }
 0x10c   : > { %1339 = shalt.err (!%p1336_p7)
}
 0x10d   : > { %1007 = dma.vmem_to_hbm [thread:$0]  (%p2216_p8), %s2017_s17, 512, %s2010_s26, %s600_s11, %s1505_s23, %s1505_s23, %s1506_s20  }
 0x10e   : > { %598 = vst [vmem:[%s1830_s0] sm:$0xff] %v597_v37  ;;  %s1340_s24 = scalar_lea.vmem %s2062_s19, 128  ;;  %s1508_s29 = smov [#allocation11]  }
 0x10f   : > { %p1341_p10 = scmp.ne.s32.totalorder %s2062_s19, %s1340_s24  ;;  %s1344_s5 = sshll.u32 %s1508_s29, 4  ;;  %s1345_s5 = int_to_ptr.vmem [resolvable:$false] %s1344_s5 }
 0x110   : > { %s1346_s3 = scalar_lea.vmem %s1345_s5, 256  ;;  %p1347_p4 = scmp.lt.s32.totalorder %s2062_s19, %s1345_s5 }
 0x111   : > { %p1342_p6 = pnand %p1341_p10, %p2216_p8  ;;  %p1348_p11 = scmp.lt.s32.totalorder %s1346_s3, %s1340_s24 }
 0x113   : > { %p1343_p5 = pneg %p1342_p6  ;;  %p1349_p0 = por %p1348_p11, %p1347_p4 }
 0x115   : > { %p1350_p9 = pnand %p1349_p0, %p1343_p5 }
 0x117   : > { %1353 = shalt.err (!%p1350_p9)
}
 0x118   : > { %s1354_s30 = scalar_lea.hbm %s2058_s15, 128  ;;  %s1358_s26 = scalar_lea.hbm %s2219_s10, 512 }
 0x119   : > { %p1355_p12 = scmp.ne.s32.totalorder %s2058_s15, %s1354_s30  ;;  %p1359_p13 = scmp.lt.u32.totalorder %s2058_s15, %s2219_s10 }
 0x11a   : > { %p1360_p3 = scmp.lt.u32.totalorder %s1358_s26, %s1354_s30  ;;  %p1362_p10 = scmp.lt.u32.totalorder %s1354_s30, %s2058_s15 }
 0x11b   : > { %p1356_p1 = pnand %p1355_p12, %p2216_p8 }
 0x11c   : > { %p1361_p7 = por %p1360_p3, %p1359_p13 }
 0x11d   : > { %p1357_p2 = pneg %p1356_p1 }
 0x11e   : > { %p1363_p6 = por %p1362_p10, %p1361_p7 }
 0x120   : > { %p1364_p5 = pnand %p1363_p6, %p1357_p2 }
 0x122   : > { %1367 = shalt.err (!%p1364_p5)
}
 0x123   : > { %1009 = dma.vmem_to_hbm [thread:$0]  (%p2216_p8), %s2062_s19, 128, %s2058_s15, %s2022_s27  }
 0x124 PF: > { %s2220_s11 = sld [smem:[#allocation19_spill]]  ;;  %s2221_s4 = sld [smem:[#allocation29_spill]] }
 0x125   : > { %p1039_p4 = scmp.ge.s32.totalorder %s1490_s9, 2 }
 0x12a   : > { %s693_s21 = sand.u32 1, %s2220_s11   ;;  %p2222_p11 = scmp.ne.s32.totalorder %s2221_s4, 0 }
 0x12b   : > { %s694_s7 = scalar_lea.sflag [#allocation4], %s693_s21 }
 0x12c   : > { %p1026_p0 = pnand %p1039_p4, %p2222_p11 }
 0x12e   : > { %1429 = dma.done.wait (!%p1026_p0), %s694_s7, 512  }
 0x12f   : > { %1431 = vsyncadd (!%p1026_p0), %s694_s7, 4294966784  ;;  %s2223_s14 = sadd.s32 4294967294, %s1490_s9  }
 0x130   : > { %s702_s16 = sand.u32 1, %s2223_s14  }
 0x131   : > { %s703_s28 = scalar_lea.sflag [#allocation10], %s702_s16 }
 0x132   : > { %1433 = dma.done.wait (!%p1026_p0), %s703_s28, 640  }
 0x133   : > { %1435 = vsyncadd (!%p1026_p0), %s703_s28, 4294966656  ;;  %s721_s13 = scalar_lea.sflag [#allocation13], %s693_s21 }
 0x134   : > { %1437 = dma.done.wait (!%p1026_p0), %s721_s13, 128  }
 0x135   : > { %1439 = vsyncadd (!%p1026_p0), %s721_s13, 4294967168  ;;  %s32_s9 = sadd.s32 1, %s1490_s9   ;;  %s2225_s27 = sld [smem:[#allocation20_spill]] }
 0x136   : > { %p2121_p8 = scmp.ge.s32.totalorder %s32_s9, 10   ;;  %s2226_s23 = sld [smem:[#allocation28_spill]] }
 0x137   : > { %s2227_s15 = sld [smem:[#allocation21_spill]]  ;;  %s2228_s26 = sld [smem:[#allocation27_spill]] }
 0x138   : > { %s2229_s29 = sld [smem:[#allocation22_spill]]  ;;  %s2230_s28 = sld [smem:[#allocation23_spill]] }
 0x139   : > { %s2231_s30 = sld [smem:[#allocation24_spill]]  ;;  %s2232_s7 = sld [smem:[#allocation25_spill]] }
 0x13a   : > { %s2233_s5 = sld [smem:[#allocation26_spill]]  ;;  %s2234_s21 = smov %s1446_s22 }
 0x13b   : > { %s2235_s22 = smov %s2225_s27  ;;  %s2236_s24 = smov %s1458_s25 }
 0x13c   :  { %31 = sbr.rel (!%p2121_p8) target bundleno = 22 (0x16), region = 166 }
 0x13d   : > { %s2237_s25 = smov %s2227_s15 }
 0x13e   : > { %s2238_s27 = smov %s2229_s29  ;;  %s2239_s29 = smov %s1486_s8 }
 0x140   : > { %s2240_s8 = smov %s2233_s5 }
 0x143   :  { %726 = vsyncpa [#allocation3], 1 }
 0x144   :  { %728 = vsyncpa [#allocation3 + $0x1], 1 }
 0x145   :  { %729 = vsyncpa [#allocation6], 1 }
 0x146   :  { %731 = vsyncpa [#allocation6 + $0x1], 1 }
 0x147   :  { %732 = vsyncpa [#allocation4], 1 }
 0x148   :  { %734 = vsyncpa [#allocation4 + $0x1], 1 }
 0x149   :  { %735 = vsyncpa [#allocation10], 1 }
 0x14a   :  { %737 = vsyncpa [#allocation10 + $0x1], 1 }
 0x14b   :  { %738 = vsyncpa [#allocation13], 1 }
 0x14c   :  { %740 = vsyncpa [#allocation13 + $0x1], 1 }

</bundles_post_ra>
